<compile_context>
chip_gen: v5e
topology: v5e:2x2
jax: 0.10.0
libtpu: 0.0.40
codegen_flags: <defaults>
</compile_context>

<pallas_src>
import math

import jax
import jax.numpy as jnp
from jax.experimental import pallas as pl
from jax.experimental.pallas import tpu as pltpu


NEG_SLOPE = 0.2  # LeakyReLU(0.2)


def _round_up(a, b):
    return pl.cdiv(a, b) * b


def style_encoder_kernel(x_ref, w_in_ref, w_hid_ref, w_out_ref, b_ref, out_ref):
    """Fused 8-layer MLP for one batch tile.

    x_ref    : (TM, in_dim)           f32
    w_in_ref : (in_dim, hidden)       bf16
    w_hid_ref: (6, hidden, hidden)    bf16
    w_out_ref: (hidden, out_dim)      bf16
    b_ref    : (8, hidden)            f32   (last row zero-padded past out_dim)
    out_ref  : (TM, out_dim)          f32
    """
    n_hidden_mms = w_hid_ref.shape[0]          # 6 hidden->hidden layers
    out_dim = out_ref.shape[-1]

    b_all = b_ref[...]                         # (8, hidden) f32

    def leaky(h):
        # mul + vmax on the VPU (cheaper than cmp+select)
        return jnp.maximum(h, NEG_SLOPE * h)

    # Layer 0: (TM, in_dim) @ (in_dim, hidden) — bf16 operands, f32 accumulation.
    h = jnp.dot(x_ref[...].astype(jnp.bfloat16), w_in_ref[...],
                preferred_element_type=jnp.float32)
    h = leaky(h + b_all[0][None, :])

    # Layers 1..6: hidden -> hidden (static unrolled; static slice of stacked W).
    for i in range(n_hidden_mms):
        h = jnp.dot(h.astype(jnp.bfloat16), w_hid_ref[i],
                    preferred_element_type=jnp.float32)
        h = leaky(h + b_all[i + 1][None, :])

    # Layer 7: hidden -> out_dim, activation applied (module ends with actv).
    h = jnp.dot(h.astype(jnp.bfloat16), w_out_ref[...],
                preferred_element_type=jnp.float32)
    h = leaky(h + b_all[n_hidden_mms + 1][None, :out_dim])

    out_ref[...] = h.astype(out_ref.dtype)


def style_encoder_forward(x, params, *, tm=128):
    """x: (batch, in_dim) f32.  params: list of 8 (W, b), W:(in, out) f32, b:(out,) f32."""
    assert len(params) == 8, "Style_encoder has exactly 8 Linear layers"
    in_dim = params[0][0].shape[0]
    hidden = params[0][0].shape[1]
    out_dim = params[-1][0].shape[1]
    batch = x.shape[0]

    # --- pack parameters into 4 operands (fewer, larger DMAs) ---
    w_in = params[0][0].astype(jnp.bfloat16)                          # (in, hidden)
    w_hid = jnp.stack([params[i][0] for i in range(1, 7)]).astype(jnp.bfloat16)  # (6, h, h)
    w_out = params[7][0].astype(jnp.bfloat16)                         # (hidden, out)
    b_rows = []
    for _, b in params:
        b = jnp.reshape(b, (-1,)).astype(jnp.float32)
        if b.shape[0] < hidden:
            b = jnp.pad(b, (0, hidden - b.shape[0]))
        b_rows.append(b)
    b_pack = jnp.stack(b_rows)                                        # (8, hidden) f32

    # --- batch tiling (parallel grid axis); pad batch to a multiple of the tile ---
    tm_eff = min(tm, _round_up(batch, 8))
    padded = _round_up(batch, tm_eff)
    if padded != batch:
        x = jnp.pad(x, ((0, padded - batch), (0, 0)))
    grid = (padded // tm_eff,)

    out = pl.pallas_call(
        style_encoder_kernel,
        out_shape=jax.ShapeDtypeStruct((padded, out_dim), x.dtype),
        grid=grid,
        in_specs=[
            pl.BlockSpec((tm_eff, in_dim), lambda i: (i, 0)),          # x: tiled on batch
            pl.BlockSpec((in_dim, hidden), lambda i: (0, 0)),          # weights: resident
            pl.BlockSpec((6, hidden, hidden), lambda i: (0, 0, 0)),
            pl.BlockSpec((hidden, out_dim), lambda i: (0, 0)),
            pl.BlockSpec((8, hidden), lambda i: (0, 0)),
        ],
        out_specs=pl.BlockSpec((tm_eff, out_dim), lambda i: (i, 0)),
        compiler_params=pltpu.CompilerParams(
            dimension_semantics=("parallel",),       # 2-TC sharding on v7x
            vmem_limit_bytes=32 * 1024 * 1024,       # safe on v5e/v6e/v7x for these tiles
        ),
    )(x, w_in, w_hid, w_out, b_pack)

    return out[:batch]


def make_params(key, input_dim, hidden_dim, output_dim, n_hidden_layers=7):
    """PyTorch nn.Linear-style init: U(-1/sqrt(fan_in), 1/sqrt(fan_in)).

    Layer dims: in->hidden, 6x hidden->hidden, hidden->out  (8 Linear layers)."""
    dims = [input_dim] + [hidden_dim] * n_hidden_layers + [output_dim]
    params = []
    for i in range(len(dims) - 1):
        fan_in, fan_out = dims[i], dims[i + 1]
        key, kw, kb = jax.random.split(key, 3)
        bound = 1.0 / math.sqrt(fan_in)
        w = jax.random.uniform(kw, (fan_in, fan_out), jnp.float32, -bound, bound)
        b = jax.random.uniform(kb, (fan_out,), jnp.float32, -bound, bound)
        params.append((w, b))
    return params


def reference_forward(x, params):
    """Pure-JAX reference matching the kernel numerics (bf16 operands, f32 accumulate)."""
    h = x.astype(jnp.float32)
    for w, b in params:
        h = jnp.dot(h.astype(jnp.bfloat16), w.astype(jnp.bfloat16),
                    preferred_element_type=jnp.float32) + jnp.reshape(b, (1, -1))
        h = jnp.maximum(h, NEG_SLOPE * h)
    return h


if __name__ == "__main__":
    # Small, module-consistent shapes: latent (input/output) dim=32, hidden=128,
    # batch=256 so the batch grid (tm=128 -> 2 tiles) is actually exercised.
    batch, latent_dim, hidden_dim = 256, 32, 128

    key = jax.random.PRNGKey(0)
    key, kx = jax.random.split(key)
    x = jax.random.normal(kx, (batch, latent_dim), jnp.float32)

    params = make_params(key, latent_dim, hidden_dim, latent_dim)

    out = style_encoder_forward(x, params, tm=128)
    out = jax.block_until_ready(out)

    ref = reference_forward(x, params)
    assert out.shape == (batch, latent_dim)
    assert jnp.allclose(out, ref, atol=2e-3, rtol=2e-3), float(jnp.max(jnp.abs(out - ref)))

    print("KERNEL_OK")
</pallas_src>

<mosaic_0001>
module attributes {stable_mosaic.version = 11 : i64} {
  func.func @style_encoder_kernel(%arg0: i32, %arg1: memref<128x32xf32, #tpu.memory_space<vmem>>, %arg2: memref<32x128xbf16, #tpu.memory_space<vmem>>, %arg3: memref<6x128x128xbf16, #tpu.memory_space<vmem>>, %arg4: memref<128x32xbf16, #tpu.memory_space<vmem>>, %arg5: memref<8x128xf32, #tpu.memory_space<vmem>>, %arg6: memref<128x32xf32, #tpu.memory_space<vmem>>) attributes {dimension_semantics = [#tpu.dimension_semantics<parallel>], iteration_bounds = array<i64: 2>, scalar_prefetch = 0 : i64, scratch_operands = 0 : i64, tpu.core_type = #tpu.core_type<tc>, window_params = [{transform_indices = @transform_0, window_bounds = array<i64: 128, 32>}, {pipeline_mode = #tpu.pipeline_mode<synchronous>, transform_indices = @transform_1, window_bounds = array<i64: 32, 128>}, {pipeline_mode = #tpu.pipeline_mode<synchronous>, transform_indices = @transform_2, window_bounds = array<i64: 6, 128, 128>}, {pipeline_mode = #tpu.pipeline_mode<synchronous>, transform_indices = @transform_3, window_bounds = array<i64: 128, 32>}, {pipeline_mode = #tpu.pipeline_mode<synchronous>, transform_indices = @transform_4, window_bounds = array<i64: 8, 128>}, {transform_indices = @transform_5, window_bounds = array<i64: 128, 32>}]} {
    %c0 = arith.constant 0 : index
    %c0_0 = arith.constant 0 : index
    %0 = vector.load %arg5[%c0, %c0_0] : memref<8x128xf32, #tpu.memory_space<vmem>>, vector<8x128xf32>
    %c0_1 = arith.constant 0 : index
    %c0_2 = arith.constant 0 : index
    %1 = vector.load %arg1[%c0_1, %c0_2] : memref<128x32xf32, #tpu.memory_space<vmem>>, vector<128x32xf32>
    %2 = arith.truncf %1 : vector<128x32xf32> to vector<128x32xbf16>
    %c0_3 = arith.constant 0 : index
    %c0_4 = arith.constant 0 : index
    %3 = vector.load %arg2[%c0_3, %c0_4] : memref<32x128xbf16, #tpu.memory_space<vmem>>, vector<32x128xbf16>
    %cst = arith.constant dense<0.000000e+00> : vector<128x128xf32>
    %4 = tpu.matmul %2, %3, %cst {dimension_numbers = #tpu.dot_dimension_numbers<[1], [0], [0], [1], [0, 0, 1, 1], [], []>} : vector<128x32xbf16>, vector<32x128xbf16>, vector<128x128xf32> -> vector<128x128xf32>
    %5 = vector.extract_strided_slice %0 {offsets = [0, 0], sizes = [1, 128], strides = [1, 1]} : vector<8x128xf32> to vector<1x128xf32>
    %6 = vector.shape_cast %5 : vector<1x128xf32> to vector<128xf32>
    %7 = vector.shape_cast %6 : vector<128xf32> to vector<1x128xf32>
    %8 = vector.broadcast %7 : vector<1x128xf32> to vector<128x128xf32>
    %9 = arith.addf %4, %8 : vector<128x128xf32>
    %cst_5 = arith.constant 2.000000e-01 : f32
    %10 = vector.broadcast %cst_5 : f32 to vector<128x128xf32>
    %11 = arith.mulf %10, %9 : vector<128x128xf32>
    %12 = arith.maximumf %9, %11 : vector<128x128xf32>
    %13 = arith.truncf %12 : vector<128x128xf32> to vector<128x128xbf16>
    %c0_6 = arith.constant 0 : index
    %c0_7 = arith.constant 0 : index
    %c0_8 = arith.constant 0 : index
    %14 = vector.load %arg3[%c0_6, %c0_7, %c0_8] : memref<6x128x128xbf16, #tpu.memory_space<vmem>>, vector<1x128x128xbf16>
    %15 = vector.shape_cast %14 : vector<1x128x128xbf16> to vector<128x128xbf16>
    %cst_9 = arith.constant dense<0.000000e+00> : vector<128x128xf32>
    %16 = tpu.matmul %13, %15, %cst_9 {dimension_numbers = #tpu.dot_dimension_numbers<[1], [0], [0], [1], [0, 0, 1, 1], [], []>} : vector<128x128xbf16>, vector<128x128xbf16>, vector<128x128xf32> -> vector<128x128xf32>
    %17 = vector.extract_strided_slice %0 {offsets = [1, 0], sizes = [1, 128], strides = [1, 1]} : vector<8x128xf32> to vector<1x128xf32>
    %18 = vector.shape_cast %17 : vector<1x128xf32> to vector<128xf32>
    %19 = vector.shape_cast %18 : vector<128xf32> to vector<1x128xf32>
    %20 = vector.broadcast %19 : vector<1x128xf32> to vector<128x128xf32>
    %21 = arith.addf %16, %20 : vector<128x128xf32>
    %cst_10 = arith.constant 2.000000e-01 : f32
    %22 = vector.broadcast %cst_10 : f32 to vector<128x128xf32>
    %23 = arith.mulf %22, %21 : vector<128x128xf32>
    %24 = arith.maximumf %21, %23 : vector<128x128xf32>
    %25 = arith.truncf %24 : vector<128x128xf32> to vector<128x128xbf16>
    %c1 = arith.constant 1 : index
    %c0_11 = arith.constant 0 : index
    %c0_12 = arith.constant 0 : index
    %26 = vector.load %arg3[%c1, %c0_11, %c0_12] : memref<6x128x128xbf16, #tpu.memory_space<vmem>>, vector<1x128x128xbf16>
    %27 = vector.shape_cast %26 : vector<1x128x128xbf16> to vector<128x128xbf16>
    %cst_13 = arith.constant dense<0.000000e+00> : vector<128x128xf32>
    %28 = tpu.matmul %25, %27, %cst_13 {dimension_numbers = #tpu.dot_dimension_numbers<[1], [0], [0], [1], [0, 0, 1, 1], [], []>} : vector<128x128xbf16>, vector<128x128xbf16>, vector<128x128xf32> -> vector<128x128xf32>
    %29 = vector.extract_strided_slice %0 {offsets = [2, 0], sizes = [1, 128], strides = [1, 1]} : vector<8x128xf32> to vector<1x128xf32>
    %30 = vector.shape_cast %29 : vector<1x128xf32> to vector<128xf32>
    %31 = vector.shape_cast %30 : vector<128xf32> to vector<1x128xf32>
    %32 = vector.broadcast %31 : vector<1x128xf32> to vector<128x128xf32>
    %33 = arith.addf %28, %32 : vector<128x128xf32>
    %cst_14 = arith.constant 2.000000e-01 : f32
    %34 = vector.broadcast %cst_14 : f32 to vector<128x128xf32>
    %35 = arith.mulf %34, %33 : vector<128x128xf32>
    %36 = arith.maximumf %33, %35 : vector<128x128xf32>
    %37 = arith.truncf %36 : vector<128x128xf32> to vector<128x128xbf16>
    %c2 = arith.constant 2 : index
    %c0_15 = arith.constant 0 : index
    %c0_16 = arith.constant 0 : index
    %38 = vector.load %arg3[%c2, %c0_15, %c0_16] : memref<6x128x128xbf16, #tpu.memory_space<vmem>>, vector<1x128x128xbf16>
    %39 = vector.shape_cast %38 : vector<1x128x128xbf16> to vector<128x128xbf16>
    %cst_17 = arith.constant dense<0.000000e+00> : vector<128x128xf32>
    %40 = tpu.matmul %37, %39, %cst_17 {dimension_numbers = #tpu.dot_dimension_numbers<[1], [0], [0], [1], [0, 0, 1, 1], [], []>} : vector<128x128xbf16>, vector<128x128xbf16>, vector<128x128xf32> -> vector<128x128xf32>
    %41 = vector.extract_strided_slice %0 {offsets = [3, 0], sizes = [1, 128], strides = [1, 1]} : vector<8x128xf32> to vector<1x128xf32>
    %42 = vector.shape_cast %41 : vector<1x128xf32> to vector<128xf32>
    %43 = vector.shape_cast %42 : vector<128xf32> to vector<1x128xf32>
    %44 = vector.broadcast %43 : vector<1x128xf32> to vector<128x128xf32>
    %45 = arith.addf %40, %44 : vector<128x128xf32>
    %cst_18 = arith.constant 2.000000e-01 : f32
    %46 = vector.broadcast %cst_18 : f32 to vector<128x128xf32>
    %47 = arith.mulf %46, %45 : vector<128x128xf32>
    %48 = arith.maximumf %45, %47 : vector<128x128xf32>
    %49 = arith.truncf %48 : vector<128x128xf32> to vector<128x128xbf16>
    %c3 = arith.constant 3 : index
    %c0_19 = arith.constant 0 : index
    %c0_20 = arith.constant 0 : index
    %50 = vector.load %arg3[%c3, %c0_19, %c0_20] : memref<6x128x128xbf16, #tpu.memory_space<vmem>>, vector<1x128x128xbf16>
    %51 = vector.shape_cast %50 : vector<1x128x128xbf16> to vector<128x128xbf16>
    %cst_21 = arith.constant dense<0.000000e+00> : vector<128x128xf32>
    %52 = tpu.matmul %49, %51, %cst_21 {dimension_numbers = #tpu.dot_dimension_numbers<[1], [0], [0], [1], [0, 0, 1, 1], [], []>} : vector<128x128xbf16>, vector<128x128xbf16>, vector<128x128xf32> -> vector<128x128xf32>
    %53 = vector.extract_strided_slice %0 {offsets = [4, 0], sizes = [1, 128], strides = [1, 1]} : vector<8x128xf32> to vector<1x128xf32>
    %54 = vector.shape_cast %53 : vector<1x128xf32> to vector<128xf32>
    %55 = vector.shape_cast %54 : vector<128xf32> to vector<1x128xf32>
    %56 = vector.broadcast %55 : vector<1x128xf32> to vector<128x128xf32>
    %57 = arith.addf %52, %56 : vector<128x128xf32>
    %cst_22 = arith.constant 2.000000e-01 : f32
    %58 = vector.broadcast %cst_22 : f32 to vector<128x128xf32>
    %59 = arith.mulf %58, %57 : vector<128x128xf32>
    %60 = arith.maximumf %57, %59 : vector<128x128xf32>
    %61 = arith.truncf %60 : vector<128x128xf32> to vector<128x128xbf16>
    %c4 = arith.constant 4 : index
    %c0_23 = arith.constant 0 : index
    %c0_24 = arith.constant 0 : index
    %62 = vector.load %arg3[%c4, %c0_23, %c0_24] : memref<6x128x128xbf16, #tpu.memory_space<vmem>>, vector<1x128x128xbf16>
    %63 = vector.shape_cast %62 : vector<1x128x128xbf16> to vector<128x128xbf16>
    %cst_25 = arith.constant dense<0.000000e+00> : vector<128x128xf32>
    %64 = tpu.matmul %61, %63, %cst_25 {dimension_numbers = #tpu.dot_dimension_numbers<[1], [0], [0], [1], [0, 0, 1, 1], [], []>} : vector<128x128xbf16>, vector<128x128xbf16>, vector<128x128xf32> -> vector<128x128xf32>
    %65 = vector.extract_strided_slice %0 {offsets = [5, 0], sizes = [1, 128], strides = [1, 1]} : vector<8x128xf32> to vector<1x128xf32>
    %66 = vector.shape_cast %65 : vector<1x128xf32> to vector<128xf32>
    %67 = vector.shape_cast %66 : vector<128xf32> to vector<1x128xf32>
    %68 = vector.broadcast %67 : vector<1x128xf32> to vector<128x128xf32>
    %69 = arith.addf %64, %68 : vector<128x128xf32>
    %cst_26 = arith.constant 2.000000e-01 : f32
    %70 = vector.broadcast %cst_26 : f32 to vector<128x128xf32>
    %71 = arith.mulf %70, %69 : vector<128x128xf32>
    %72 = arith.maximumf %69, %71 : vector<128x128xf32>
    %73 = arith.truncf %72 : vector<128x128xf32> to vector<128x128xbf16>
    %c5 = arith.constant 5 : index
    %c0_27 = arith.constant 0 : index
    %c0_28 = arith.constant 0 : index
    %74 = vector.load %arg3[%c5, %c0_27, %c0_28] : memref<6x128x128xbf16, #tpu.memory_space<vmem>>, vector<1x128x128xbf16>
    %75 = vector.shape_cast %74 : vector<1x128x128xbf16> to vector<128x128xbf16>
    %cst_29 = arith.constant dense<0.000000e+00> : vector<128x128xf32>
    %76 = tpu.matmul %73, %75, %cst_29 {dimension_numbers = #tpu.dot_dimension_numbers<[1], [0], [0], [1], [0, 0, 1, 1], [], []>} : vector<128x128xbf16>, vector<128x128xbf16>, vector<128x128xf32> -> vector<128x128xf32>
    %77 = vector.extract_strided_slice %0 {offsets = [6, 0], sizes = [1, 128], strides = [1, 1]} : vector<8x128xf32> to vector<1x128xf32>
    %78 = vector.shape_cast %77 : vector<1x128xf32> to vector<128xf32>
    %79 = vector.shape_cast %78 : vector<128xf32> to vector<1x128xf32>
    %80 = vector.broadcast %79 : vector<1x128xf32> to vector<128x128xf32>
    %81 = arith.addf %76, %80 : vector<128x128xf32>
    %cst_30 = arith.constant 2.000000e-01 : f32
    %82 = vector.broadcast %cst_30 : f32 to vector<128x128xf32>
    %83 = arith.mulf %82, %81 : vector<128x128xf32>
    %84 = arith.maximumf %81, %83 : vector<128x128xf32>
    %85 = arith.truncf %84 : vector<128x128xf32> to vector<128x128xbf16>
    %c0_31 = arith.constant 0 : index
    %c0_32 = arith.constant 0 : index
    %86 = vector.load %arg4[%c0_31, %c0_32] : memref<128x32xbf16, #tpu.memory_space<vmem>>, vector<128x32xbf16>
    %cst_33 = arith.constant dense<0.000000e+00> : vector<128x32xf32>
    %87 = tpu.matmul %85, %86, %cst_33 {dimension_numbers = #tpu.dot_dimension_numbers<[1], [0], [0], [1], [0, 0, 1, 1], [], []>} : vector<128x128xbf16>, vector<128x32xbf16>, vector<128x32xf32> -> vector<128x32xf32>
    %88 = vector.extract_strided_slice %0 {offsets = [7, 0], sizes = [1, 128], strides = [1, 1]} : vector<8x128xf32> to vector<1x128xf32>
    %89 = vector.shape_cast %88 : vector<1x128xf32> to vector<128xf32>
    %90 = vector.extract_strided_slice %89 {offsets = [0], sizes = [32], strides = [1]} : vector<128xf32> to vector<32xf32>
    %91 = vector.shape_cast %90 : vector<32xf32> to vector<1x32xf32>
    %92 = vector.broadcast %91 : vector<1x32xf32> to vector<128x32xf32>
    %93 = arith.addf %87, %92 : vector<128x32xf32>
    %cst_34 = arith.constant 2.000000e-01 : f32
    %94 = vector.broadcast %cst_34 : f32 to vector<128x32xf32>
    %95 = arith.mulf %94, %93 : vector<128x32xf32>
    %96 = arith.maximumf %93, %95 : vector<128x32xf32>
    %c0_35 = arith.constant 0 : index
    %c0_36 = arith.constant 0 : index
    %97 = vector.load %arg6[%c0_35, %c0_36] : memref<128x32xf32, #tpu.memory_space<vmem>>, vector<128x32xf32>
    tpu.vector_store %arg6[%c0_35, %c0_36], %96 {strides = array<i32>} : memref<128x32xf32, #tpu.memory_space<vmem>>, vector<128x32xf32>,
    return
  }
  func.func @transform_0(%arg0: i32) -> (i32, i32) {
    %c0_i32 = arith.constant 0 : i32
    %c0_i32_0 = arith.constant 0 : i32
    return %arg0, %c0_i32 : i32, i32
  }
  func.func @transform_1(%arg0: i32) -> (i32, i32) {
    %c0_i32 = arith.constant 0 : i32
    %c0_i32_0 = arith.constant 0 : i32
    %c0_i32_1 = arith.constant 0 : i32
    return %c0_i32, %c0_i32_0 : i32, i32
  }
  func.func @transform_2(%arg0: i32) -> (i32, i32, i32) {
    %c0_i32 = arith.constant 0 : i32
    %c0_i32_0 = arith.constant 0 : i32
    %c0_i32_1 = arith.constant 0 : i32
    %c0_i32_2 = arith.constant 0 : i32
    return %c0_i32, %c0_i32_0, %c0_i32_1 : i32, i32, i32
  }
  func.func @transform_3(%arg0: i32) -> (i32, i32) {
    %c0_i32 = arith.constant 0 : i32
    %c0_i32_0 = arith.constant 0 : i32
    %c0_i32_1 = arith.constant 0 : i32
    return %c0_i32, %c0_i32_0 : i32, i32
  }
  func.func @transform_4(%arg0: i32) -> (i32, i32) {
    %c0_i32 = arith.constant 0 : i32
    %c0_i32_0 = arith.constant 0 : i32
    %c0_i32_1 = arith.constant 0 : i32
    return %c0_i32, %c0_i32_0 : i32, i32
  }
  func.func @transform_5(%arg0: i32) -> (i32, i32) {
    %c0_i32 = arith.constant 0 : i32
    %c0_i32_0 = arith.constant 0 : i32
    return %arg0, %c0_i32 : i32, i32
  }
}

</mosaic_0001>

<bundles_post_ra>
// kernel: tpu_custom_call.1
= control target key start
LH: loop header
LB: loop body
LE: loop exit
PB: predicated region body
PF: predicated region fallthrough
CT: control target
= control target key end

     0   :  { %10 = vsyncpa [#allocation3], 0  ;;  %s1969_s18 = smov 0   ;;  %s2248_s0 = inlined_call_operand.vmem [shape: f32[256,32], index: 0, kind: input, shape index: {}]   ;;  %s2249_s1 = inlined_call_operand.vmem [shape: bf16[32,128], index: 1, kind: input, shape index: {}]   ;;  %s2250_s2 = inlined_call_operand.hbm [shape: bf16[6,128,128], index: 2, kind: input, shape index: {}]   ;;  %s2251_s3 = inlined_call_operand.vmem [shape: bf16[128,32], index: 3, kind: input, shape index: {}]   ;;  %s2252_s4 = inlined_call_operand.vmem [shape: f32[8,128], index: 4, kind: input, shape index: {}]   ;;  %s2253_s5 = inlined_call_operand.vmem [shape: f32[256,32], index: 5, kind: output, shape index: {}]  }
   0x1 LB: > { %s171_s21 = sshll.u32 %s2250_s2, 4  ;;  %s1561_s22 = sadd.s32 4294967295, %s1934_s18   ;;  %s1934_s18 = sphi %s1969_s18, %s16_s18   ;;  %s172_s21 = int_to_ptr.hbm [resolvable:$true] %s171_s21 }
   0x2   : > { %p1563_p0 = scmp.ge.s32.totalorder %s1934_s18, 1  ;;  %p157_p1 = scmp.lt.s32.totalorder %s1934_s18, 3 }
   0x3   : > { %p1880_p2 = scmp.eq.s32.totalorder %s1561_s22, 0  ;;  %s1936_s23 = smov [#allocation2]  }
   0x4   : > { %p158_p3 = pnand %p1563_p0, %p157_p1  ;;  %s173_s24 = sshll.u32 %s1936_s23, 4  ;;  %s174_s24 = int_to_ptr.vmem [resolvable:$true] %s173_s24 }
   0x5   : > { %s1937_s25 = smov 64   ;;  %s1938_s26 = smov 4  }
   0x6   : > { %p1876_p4 = pneg %p158_p3  ;;  %204 = sbr.rel (%p158_p3) target bundleno = 1292 (0x50c), region = 40 }
   0x8   : > { %p1877_p5 = pnand %p1880_p2, %p1876_p4 }
   0xa   : > { %1879 = dma.hbm_to_vmem [thread:$0]  (!%p1877_p5), %s172_s21, 6144, %s174_s24, [#allocation3], %s1937_s25, %s1937_s25, %s1938_s26  }
   0xb   : > { %1929 = dma.done.wait (%p1880_p2), [#allocation3], 6144  }
   0xc   : > { %1931 = vsyncadd (%p1880_p2), [#allocation3], 4294961152  ;;  %s1568_s27 = sshll.u32 %s1561_s22, 4  ;;  %v1815_v0 = vld [vmem:[%s2249_s1 + $0x8] sm:$0xff]  ;;  %v1814_v1 = vld [vmem:[%s2249_s1] sm:$0xff]  ;;  %vm288_vm0 = vcmask 261120  }
   0xd   : > { %p234_p6 = scmp.lt.s32.totalorder %s1568_s27, 31  ;;  %319 = vmatpush.bf16.msra.mxu0 %v1815_v0  ;;  %v1823_v17 = vld [vmem:[#allocation2 + $0x38] sm:$0xff]  ;;  %v1822_v21 = vld [vmem:[#allocation2 + $0x30] sm:$0xff]  ;;  %v1821_v22 = vld [vmem:[#allocation2 + $0x28] sm:$0xff] }
   0xe   : > { %467 = vmatpush.bf16.msra.mxu1 %v1823_v17  ;;  %v1820_v23 = vld [vmem:[#allocation2 + $0x20] sm:$0xff]  ;;  %v1819_v27 = vld [vmem:[#allocation2 + $0x18] sm:$0xff]  ;;  %v1818_v28 = vld [vmem:[#allocation2 + $0x10] sm:$0xff] }
   0xf   : > { %s2255_s27 = smov (!%p234_p6, %s1568_s27), 31  ;;  %v1817_v29 = vld [vmem:[#allocation2 + $0x8] sm:$0xff]  ;;  %v1816_v30 = vld [vmem:[#allocation2] sm:$0xff] }
  0x10   : > { %s1569_s28 = sshll.u32 %s2255_s27, 3  ;;  %v2023_v34 = vld [vmem:[%s2252_s4] sm:$0xff] }
  0x11   : > { %s1988_s6 = scalar_lea.vmem %s2248_s0, %s1569_s28  ;;  %320 = vmatpush.bf16.msra.mxu0 %v1814_v1  ;;  %v2026_v36 = vperm.slane %v2023_v34, 0  ;;  %s2196_s11 = scalar_lea.vmem %s2253_s5, %s1569_s28 }
  0x12   : > { %v247_v2 = vld [vmem:[%s1988_s6] sm:$0xff]  ;;  %v248_v3 = vld [vmem:[%s1988_s6 + $0x8] sm:$0xff]  ;;  %v249_v5 = vld [vmem:[%s1988_s6 + $0x10] sm:$0xff]  ;;  %468 = vmatpush.bf16.msra.mxu1 %v1822_v21 }
  0x13   : > { %v263_v4 = vpack.c.bf16 %v248_v3, %v247_v2  ;;  %v250_v6 = vld [vmem:[%s1988_s6 + $0x18] sm:$0xff]  ;;  %v251_v8 = vld [vmem:[%s1988_s6 + $0x20] sm:$0xff]  ;;  %v252_v9 = vld [vmem:[%s1988_s6 + $0x28] sm:$0xff] }
  0x14   : > { %v264_v7 = vpack.c.bf16 %v250_v6, %v249_v5  ;;  %v265_v10 = vpack.c.bf16 %v252_v9, %v251_v8  ;;  %v253_v11 = vld [vmem:[%s1988_s6 + $0x30] sm:$0xff]  ;;  %v254_v12 = vld [vmem:[%s1988_s6 + $0x38] sm:$0xff]  ;;  %v255_v14 = vld [vmem:[%s1988_s6 + $0x40] sm:$0xff] }
  0x15   : > { %1580 = vmatmul.msk.bf16.vlgmr.msra.gmra.mxu0 %vm288_vm0, %v263_v4  ;;  %v266_v13 = vpack.c.bf16 %v254_v12, %v253_v11  ;;  %v256_v15 = vld [vmem:[%s1988_s6 + $0x48] sm:$0xff]  ;;  %v257_v18 = vld [vmem:[%s1988_s6 + $0x50] sm:$0xff]  ;;  %v258_v19 = vld [vmem:[%s1988_s6 + $0x58] sm:$0xff] }
  0x16   : > { %v267_v16 = vpack.c.bf16 %v256_v15, %v255_v14  ;;  %v268_v20 = vpack.c.bf16 %v258_v19, %v257_v18  ;;  %469 = vmatpush.bf16.msra.mxu1 %v1821_v22  ;;  %v259_v24 = vld [vmem:[%s1988_s6 + $0x60] sm:$0xff]  ;;  %v260_v25 = vld [vmem:[%s1988_s6 + $0x68] sm:$0xff]  ;;  %v261_v31 = vld [vmem:[%s1988_s6 + $0x70] sm:$0xff] }
  0x17   : > { %v269_v26 = vpack.c.bf16 %v260_v25, %v259_v24  ;;  %v262_v32 = vld [vmem:[%s1988_s6 + $0x78] sm:$0xff] }
  0x18   : > { %v270_v33 = vpack.c.bf16 %v262_v32, %v261_v31  ;;  %v1831_v25 = vld [vmem:[#allocation2 + $0x78] sm:$0xff]  ;;  %v1828_v31 = vld [vmem:[#allocation2 + $0x60] sm:$0xff] }
  0x19   : > { %622 = vmatpush.bf16.msra.mxu2 %v1831_v25 }
  0x1a   : > { %470 = vmatpush.bf16.msra.mxu1 %v1820_v23 }
  0x1e   : > { %471 = vmatpush.bf16.msra.mxu1 %v1819_v27 }
  0x22   : > { %472 = vmatpush.bf16.msra.mxu1 %v1818_v28  ;;  %v1830_v28 = vld [vmem:[#allocation2 + $0x70] sm:$0xff] }
  0x23   : > { %623 = vmatpush.bf16.msra.mxu2 %v1830_v28 }
  0x25   : > { %1581 = vmatmul.msk.bf16.gmra.mxu0 %vm288_vm0, %v264_v7 }
  0x26   : > { %473 = vmatpush.bf16.msra.mxu1 %v1817_v29  ;;  %v1829_v29 = vld [vmem:[#allocation2 + $0x68] sm:$0xff] }
  0x27   : > { %624 = vmatpush.bf16.msra.mxu2 %v1829_v29 }
  0x2a   : > { %474 = vmatpush.bf16.msra.mxu1 %v1816_v30 }
  0x2b   : > { %625 = vmatpush.bf16.msra.mxu2 %v1828_v31 }
  0x35   : > { %1582 = vmatmul.msk.bf16.gmra.mxu0 %vm288_vm0, %v265_v10 }
  0x45   : > { %1583 = vmatmul.msk.bf16.gmra.mxu0 %vm288_vm0, %v266_v13 }
  0x55   : > { %1584 = vmatmul.msk.bf16.gmra.mxu0 %vm288_vm0, %v267_v16 }
  0x65   : > { %1585 = vmatmul.msk.bf16.gmra.mxu0 %vm288_vm0, %v268_v20 }
  0x75   : > { %1586 = vmatmul.msk.bf16.gmra.mxu0 %vm288_vm0, %v269_v26 }
  0x85   : > { %1587 = vmatmul.msk.bf16.gmra.mxu0 %vm288_vm0, %v270_v33 }
  0x92   : > { %v322_v35 = vpop.f32.mrf.mxu0 }
  0x93   : > { %v323_v37 = vadd.f32 %v322_v35, %v2026_v36 }
  0x95   : > { %v362_v39 = vmul.f32 0.2, %v323_v37 }
  0x97   : > { %v378_v42 = vmax.f32 %v323_v37, %v362_v39 }
  0x9a   : > { %v324_v38 = vpop.f32.mrf.mxu0 }
  0x9b   : > { %v325_v40 = vadd.f32 %v324_v38, %v2026_v36 }
  0x9d   : > { %v363_v41 = vmul.f32 0.2, %v325_v40 }
  0x9f   : > { %v379_v43 = vmax.f32 %v325_v40, %v363_v41  ;;  %v1827_v40 = vld [vmem:[#allocation2 + $0x58] sm:$0xff] }
  0xa0   : > { %626 = vmatpush.bf16.msra.mxu2 %v1827_v40 }
  0xa1   : > { %v394_v44 = vpack.c.bf16 %v379_v43, %v378_v42  ;;  %v1826_v43 = vld [vmem:[#allocation2 + $0x50] sm:$0xff] }
  0xa2   : > { %v327_v45 = vpop.f32.mrf.mxu0 }
  0xa3   : > { %475 = vmatmul.bf16.vlgmr.msra.gmra.mxu1 %v394_v44  ;;  %v328_v46 = vadd.f32 %v327_v45, %v2026_v36  ;;  %v1825_v45 = vld [vmem:[#allocation2 + $0x48] sm:$0xff] }
  0xa4   : > { %627 = vmatpush.bf16.msra.mxu2 %v1826_v43 }
  0xa5   : > { %v364_v48 = vmul.f32 0.2, %v328_v46 }
  0xa7   : > { %v380_v51 = vmax.f32 %v328_v46, %v364_v48 }
  0xa8   : > { %628 = vmatpush.bf16.msra.mxu2 %v1825_v45 }
  0xaa   : > { %v329_v47 = vpop.f32.mrf.mxu0 }
  0xab   : > { %v330_v49 = vadd.f32 %v329_v47, %v2026_v36 }
  0xad   : > { %v365_v50 = vmul.f32 0.2, %v330_v49 }
  0xaf   : > { %v381_v52 = vmax.f32 %v330_v49, %v365_v50  ;;  %v1824_v49 = vld [vmem:[#allocation2 + $0x40] sm:$0xff] }
  0xb0   : > { %629 = vmatpush.bf16.msra.mxu2 %v1824_v49 }
  0xb1   : > { %v395_v53 = vpack.c.bf16 %v381_v52, %v380_v51 }
  0xb2   : > { %v332_v54 = vpop.f32.mrf.mxu0 }
  0xb3   : > { %480 = vmatmul.bf16.gmra.mxu1 %v395_v53  ;;  %v333_v55 = vadd.f32 %v332_v54, %v2026_v36 }
  0xb5   : > { %v366_v57 = vmul.f32 0.2, %v333_v55 }
  0xb7   : > { %v382_v60 = vmax.f32 %v333_v55, %v366_v57  ;;  %v2045_v55 = vperm.slane %v2023_v34, 1 }
  0xba   : > { %v334_v56 = vpop.f32.mrf.mxu0 }
  0xbb   : > { %v335_v58 = vadd.f32 %v334_v56, %v2026_v36 }
  0xbd   : > { %v367_v59 = vmul.f32 0.2, %v335_v58 }
  0xbf   : > { %v383_v61 = vmax.f32 %v335_v58, %v367_v59 }
  0xc1   : > { %v396_v62 = vpack.c.bf16 %v383_v61, %v382_v60 }
  0xc2   : > { %v337_v63 = vpop.f32.mrf.mxu0 }
  0xc3   : > { %485 = vmatmul.bf16.gmra.mxu1 %v396_v62  ;;  %v338_v0 = vadd.f32 %v337_v63, %v2026_v36 }
  0xc5   : > { %v368_v2 = vmul.f32 0.2, %v338_v0 }
  0xc7   : > { %v384_v5 = vmax.f32 %v338_v0, %v368_v2 }
  0xca   : > { %v339_v1 = vpop.f32.mrf.mxu0 }
  0xcb   : > { %v340_v3 = vadd.f32 %v339_v1, %v2026_v36 }
  0xcd   : > { %v369_v4 = vmul.f32 0.2, %v340_v3 }
  0xcf   : > { %v385_v6 = vmax.f32 %v340_v3, %v369_v4 }
  0xd1   : > { %v397_v7 = vpack.c.bf16 %v385_v6, %v384_v5 }
  0xd2   : > { %v342_v8 = vpop.f32.mrf.mxu0 }
  0xd3   : > { %490 = vmatmul.bf16.gmra.mxu1 %v397_v7  ;;  %v343_v9 = vadd.f32 %v342_v8, %v2026_v36 }
  0xd5   : > { %v370_v11 = vmul.f32 0.2, %v343_v9 }
  0xd7   : > { %v386_v14 = vmax.f32 %v343_v9, %v370_v11 }
  0xda   : > { %v344_v10 = vpop.f32.mrf.mxu0 }
  0xdb   : > { %v345_v12 = vadd.f32 %v344_v10, %v2026_v36 }
  0xdd   : > { %v371_v13 = vmul.f32 0.2, %v345_v12 }
  0xdf   : > { %v387_v15 = vmax.f32 %v345_v12, %v371_v13 }
  0xe1   : > { %v398_v16 = vpack.c.bf16 %v387_v15, %v386_v14 }
  0xe2   : > { %v347_v17 = vpop.f32.mrf.mxu0 }
  0xe3   : > { %495 = vmatmul.bf16.gmra.mxu1 %v398_v16  ;;  %v348_v18 = vadd.f32 %v347_v17, %v2026_v36 }
  0xe5   : > { %v372_v20 = vmul.f32 0.2, %v348_v18 }
  0xe7   : > { %v388_v23 = vmax.f32 %v348_v18, %v372_v20 }
  0xea   : > { %v349_v19 = vpop.f32.mrf.mxu0 }
  0xeb   : > { %v350_v21 = vadd.f32 %v349_v19, %v2026_v36 }
  0xed   : > { %v373_v22 = vmul.f32 0.2, %v350_v21 }
  0xef   : > { %v389_v24 = vmax.f32 %v350_v21, %v373_v22 }
  0xf1   : > { %v399_v26 = vpack.c.bf16 %v389_v24, %v388_v23 }
  0xf2   : > { %v352_v27 = vpop.f32.mrf.mxu0 }
  0xf3   : > { %500 = vmatmul.bf16.gmra.mxu1 %v399_v26  ;;  %v353_v30 = vadd.f32 %v352_v27, %v2026_v36 }
  0xf5   : > { %v374_v33 = vmul.f32 0.2, %v353_v30 }
  0xf7   : > { %v390_v38 = vmax.f32 %v353_v30, %v374_v33 }
  0xfa   : > { %v354_v32 = vpop.f32.mrf.mxu0 }
  0xfb   : > { %v355_v35 = vadd.f32 %v354_v32, %v2026_v36 }
  0xfd   : > { %v375_v37 = vmul.f32 0.2, %v355_v35 }
  0xff   : > { %v391_v39 = vmax.f32 %v355_v35, %v375_v37 }
 0x101   : > { %v400_v41 = vpack.c.bf16 %v391_v39, %v390_v38 }
 0x102   : > { %v357_v42 = vpop.f32.mrf.mxu0 }
 0x103   : > { %505 = vmatmul.bf16.gmra.mxu1 %v400_v41  ;;  %v358_v44 = vadd.f32 %v357_v42, %v2026_v36 }
 0x105   : > { %v376_v47 = vmul.f32 0.2, %v358_v44 }
 0x107   : > { %v392_v51 = vmax.f32 %v358_v44, %v376_v47  ;;  %v1839_v47 = vld [vmem:[#allocation2 + $0xb8] sm:$0xff] }
 0x108   : > { %777 = vmatpush.bf16.msra.mxu3 %v1839_v47 }
 0x10a   : > { %v359_v46 = vpop.f32.mrf.mxu0 }
 0x10b   : > { %v360_v48 = vadd.f32 %v359_v46, %v2026_v36 }
 0x10d   : > { %v377_v50 = vmul.f32 0.2, %v360_v48 }
 0x10f   : > { %v393_v52 = vmax.f32 %v360_v48, %v377_v50  ;;  %v1838_v48 = vld [vmem:[#allocation2 + $0xb0] sm:$0xff]  ;;  %v1837_v50 = vld [vmem:[#allocation2 + $0xa8] sm:$0xff] }
 0x110   : > { %778 = vmatpush.bf16.msra.mxu3 %v1838_v48 }
 0x111   : > { %v401_v53 = vpack.c.bf16 %v393_v52, %v392_v51 }
 0x113   : > { %510 = vmatmul.bf16.gmra.mxu1 %v401_v53 }
 0x114   : > { %779 = vmatpush.bf16.msra.mxu3 %v1837_v50 }
 0x120   : > { %v476_v54 = vpop.f32.mrf.mxu1 }
 0x121   : > { %v477_v56 = vadd.f32 %v476_v54, %v2045_v55 }
 0x123   : > { %v516_v58 = vmul.f32 0.2, %v477_v56 }
 0x125   : > { %v532_v61 = vmax.f32 %v477_v56, %v516_v58  ;;  %v1836_v56 = vld [vmem:[#allocation2 + $0xa0] sm:$0xff] }
 0x126   : > { %780 = vmatpush.bf16.msra.mxu3 %v1836_v56 }
 0x128   : > { %v478_v57 = vpop.f32.mrf.mxu1 }
 0x129   : > { %v479_v59 = vadd.f32 %v478_v57, %v2045_v55 }
 0x12b   : > { %v517_v60 = vmul.f32 0.2, %v479_v59 }
 0x12d   : > { %v533_v36 = vmax.f32 %v479_v59, %v517_v60 }
 0x12f   : > { %v548_v62 = vpack.c.bf16 %v533_v36, %v532_v61  ;;  %v1835_v61 = vld [vmem:[#allocation2 + $0x98] sm:$0xff] }
 0x130   : > { %v481_v63 = vpop.f32.mrf.mxu1  ;;  %781 = vmatpush.bf16.msra.mxu3 %v1835_v61 }
 0x131   : > { %630 = vmatmul.bf16.vlgmr.msra.gmra.mxu2 %v548_v62  ;;  %v482_v0 = vadd.f32 %v481_v63, %v2045_v55  ;;  %v1834_v63 = vld [vmem:[#allocation2 + $0x90] sm:$0xff] }
 0x133   : > { %v518_v2 = vmul.f32 0.2, %v482_v0 }
 0x134   : > { %782 = vmatpush.bf16.msra.mxu3 %v1834_v63 }
 0x135   : > { %v534_v5 = vmax.f32 %v482_v0, %v518_v2 }
 0x138   : > { %v483_v1 = vpop.f32.mrf.mxu1 }
 0x139   : > { %v484_v3 = vadd.f32 %v483_v1, %v2045_v55 }
 0x13b   : > { %v519_v4 = vmul.f32 0.2, %v484_v3 }
 0x13d   : > { %v535_v6 = vmax.f32 %v484_v3, %v519_v4  ;;  %v1833_v3 = vld [vmem:[#allocation2 + $0x88] sm:$0xff] }
 0x13e   : > { %783 = vmatpush.bf16.msra.mxu3 %v1833_v3 }
 0x13f   : > { %v549_v7 = vpack.c.bf16 %v535_v6, %v534_v5 }
 0x140   : > { %v486_v8 = vpop.f32.mrf.mxu1 }
 0x141   : > { %635 = vmatmul.bf16.gmra.mxu2 %v549_v7  ;;  %v487_v9 = vadd.f32 %v486_v8, %v2045_v55  ;;  %v1832_v7 = vld [vmem:[#allocation2 + $0x80] sm:$0xff] }
 0x142   : > { %784 = vmatpush.bf16.msra.mxu3 %v1832_v7  ;;  %v1841_v7 = vld [vmem:[#allocation2 + $0xc8] sm:$0xff] }
 0x143   : > { %v520_v11 = vmul.f32 0.2, %v487_v9 }
 0x145   : > { %v536_v14 = vmax.f32 %v487_v9, %v520_v11  ;;  %v2064_v9 = vperm.slane %v2023_v34, 2  ;;  %v1847_v11 = vld [vmem:[#allocation2 + $0xf8] sm:$0xff] }
 0x146   : > { %932 = vmatpush.bf16.msrb.mxu0 %v1847_v11 }
 0x148   : > { %v488_v10 = vpop.f32.mrf.mxu1 }
 0x149   : > { %v489_v12 = vadd.f32 %v488_v10, %v2045_v55 }
 0x14b   : > { %v521_v13 = vmul.f32 0.2, %v489_v12 }
 0x14d   : > { %v537_v15 = vmax.f32 %v489_v12, %v521_v13 }
 0x14f   : > { %v550_v16 = vpack.c.bf16 %v537_v15, %v536_v14 }
 0x150   : > { %v491_v17 = vpop.f32.mrf.mxu1 }
 0x151   : > { %640 = vmatmul.bf16.gmra.mxu2 %v550_v16  ;;  %v492_v18 = vadd.f32 %v491_v17, %v2045_v55 }
 0x153   : > { %v522_v20 = vmul.f32 0.2, %v492_v18 }
 0x155   : > { %v538_v23 = vmax.f32 %v492_v18, %v522_v20  ;;  %v1846_v20 = vld [vmem:[#allocation2 + $0xf0] sm:$0xff] }
 0x156   : > { %933 = vmatpush.bf16.msrb.mxu0 %v1846_v20 }
 0x158   : > { %v493_v19 = vpop.f32.mrf.mxu1 }
 0x159   : > { %v494_v21 = vadd.f32 %v493_v19, %v2045_v55 }
 0x15b   : > { %v523_v22 = vmul.f32 0.2, %v494_v21 }
 0x15d   : > { %v539_v24 = vmax.f32 %v494_v21, %v523_v22 }
 0x15f   : > { %v551_v25 = vpack.c.bf16 %v539_v24, %v538_v23 }
 0x160   : > { %v496_v26 = vpop.f32.mrf.mxu1 }
 0x161   : > { %645 = vmatmul.bf16.gmra.mxu2 %v551_v25  ;;  %v497_v27 = vadd.f32 %v496_v26, %v2045_v55 }
 0x163   : > { %v524_v29 = vmul.f32 0.2, %v497_v27 }
 0x165   : > { %v540_v32 = vmax.f32 %v497_v27, %v524_v29 }
 0x168   : > { %v498_v28 = vpop.f32.mrf.mxu1 }
 0x169   : > { %v499_v30 = vadd.f32 %v498_v28, %v2045_v55 }
 0x16b   : > { %v525_v31 = vmul.f32 0.2, %v499_v30 }
 0x16d   : > { %v541_v33 = vmax.f32 %v499_v30, %v525_v31  ;;  %v1845_v30 = vld [vmem:[#allocation2 + $0xe8] sm:$0xff] }
 0x16e   : > { %934 = vmatpush.bf16.msrb.mxu0 %v1845_v30 }
 0x16f   : > { %v552_v35 = vpack.c.bf16 %v541_v33, %v540_v32 }
 0x170   : > { %v501_v37 = vpop.f32.mrf.mxu1 }
 0x171   : > { %650 = vmatmul.bf16.gmra.mxu2 %v552_v35  ;;  %v502_v38 = vadd.f32 %v501_v37, %v2045_v55 }
 0x173   : > { %v526_v40 = vmul.f32 0.2, %v502_v38 }
 0x175   : > { %v542_v43 = vmax.f32 %v502_v38, %v526_v40 }
 0x178   : > { %v503_v39 = vpop.f32.mrf.mxu1 }
 0x179   : > { %v504_v41 = vadd.f32 %v503_v39, %v2045_v55 }
 0x17b   : > { %v527_v42 = vmul.f32 0.2, %v504_v41 }
 0x17d   : > { %v543_v44 = vmax.f32 %v504_v41, %v527_v42  ;;  %v1844_v42 = vld [vmem:[#allocation2 + $0xe0] sm:$0xff] }
 0x17e   : > { %935 = vmatpush.bf16.msrb.mxu0 %v1844_v42 }
 0x17f   : > { %v553_v45 = vpack.c.bf16 %v543_v44, %v542_v43 }
 0x180   : > { %v506_v46 = vpop.f32.mrf.mxu1 }
 0x181   : > { %655 = vmatmul.bf16.gmra.mxu2 %v553_v45  ;;  %v507_v49 = vadd.f32 %v506_v46, %v2045_v55 }
 0x183   : > { %v528_v52 = vmul.f32 0.2, %v507_v49 }
 0x185   : > { %v544_v57 = vmax.f32 %v507_v49, %v528_v52  ;;  %v1843_v52 = vld [vmem:[#allocation2 + $0xd8] sm:$0xff] }
 0x186   : > { %936 = vmatpush.bf16.msrb.mxu0 %v1843_v52 }
 0x188   : > { %v508_v51 = vpop.f32.mrf.mxu1 }
 0x189   : > { %v509_v53 = vadd.f32 %v508_v51, %v2045_v55 }
 0x18b   : > { %v529_v54 = vmul.f32 0.2, %v509_v53 }
 0x18d   : > { %v545_v58 = vmax.f32 %v509_v53, %v529_v54 }
 0x18f   : > { %v554_v59 = vpack.c.bf16 %v545_v58, %v544_v57 }
 0x190   : > { %v511_v60 = vpop.f32.mrf.mxu1 }
 0x191   : > { %660 = vmatmul.bf16.gmra.mxu2 %v554_v59  ;;  %v512_v36 = vadd.f32 %v511_v60, %v2045_v55 }
 0x193   : > { %v530_v0 = vmul.f32 0.2, %v512_v36 }
 0x195   : > { %v546_v4 = vmax.f32 %v512_v36, %v530_v0 }
 0x198   : > { %v513_v62 = vpop.f32.mrf.mxu1 }
 0x199   : > { %v514_v1 = vadd.f32 %v513_v62, %v2045_v55  ;;  %v1842_v62 = vld [vmem:[#allocation2 + $0xd0] sm:$0xff] }
 0x19a   : > { %937 = vmatpush.bf16.msrb.mxu0 %v1842_v62 }
 0x19b   : > { %v531_v2 = vmul.f32 0.2, %v514_v1 }
 0x19d   : > { %v547_v5 = vmax.f32 %v514_v1, %v531_v2 }
 0x19e   : > { %938 = vmatpush.bf16.msrb.mxu0 %v1841_v7 }
 0x19f   : > { %v555_v6 = vpack.c.bf16 %v547_v5, %v546_v4 }
 0x1a1   : > { %665 = vmatmul.bf16.gmra.mxu2 %v555_v6 }
 0x1b4   : > { %v631_v8 = vpop.f32.mrf.mxu2 }
 0x1b5   : > { %v632_v10 = vadd.f32 %v631_v8, %v2064_v9 }
 0x1b7   : > { %v671_v55 = vmul.f32 0.2, %v632_v10 }
 0x1b9   : > { %v687_v15 = vmax.f32 %v632_v10, %v671_v55 }
 0x1bc   : > { %v633_v12 = vpop.f32.mrf.mxu2 }
 0x1bd   : > { %v634_v13 = vadd.f32 %v633_v12, %v2064_v9 }
 0x1bf   : > { %v672_v14 = vmul.f32 0.2, %v634_v13 }
 0x1c1   : > { %v688_v16 = vmax.f32 %v634_v13, %v672_v14 }
 0x1c3   : > { %v703_v17 = vpack.c.bf16 %v688_v16, %v687_v15 }
 0x1c4   : > { %v636_v18 = vpop.f32.mrf.mxu2 }
 0x1c5   : > { %785 = vmatmul.bf16.vlgmr.msra.gmra.mxu3 %v703_v17  ;;  %v637_v19 = vadd.f32 %v636_v18, %v2064_v9 }
 0x1c7   : > { %v673_v22 = vmul.f32 0.2, %v637_v19 }
 0x1c9   : > { %v689_v25 = vmax.f32 %v637_v19, %v673_v22 }
 0x1cc   : > { %v638_v21 = vpop.f32.mrf.mxu2 }
 0x1cd   : > { %v639_v23 = vadd.f32 %v638_v21, %v2064_v9  ;;  %v1840_v21 = vld [vmem:[#allocation2 + $0xc0] sm:$0xff] }
 0x1ce   : > { %939 = vmatpush.bf16.msrb.mxu0 %v1840_v21 }
 0x1cf   : > { %v674_v24 = vmul.f32 0.2, %v639_v23 }
 0x1d1   : > { %v690_v26 = vmax.f32 %v639_v23, %v674_v24 }
 0x1d3   : > { %v704_v27 = vpack.c.bf16 %v690_v26, %v689_v25  ;;  %v1855_v26 = vld [vmem:[#allocation2 + $0x138] sm:$0xff] }
 0x1d4   : > { %v641_v28 = vpop.f32.mrf.mxu2  ;;  %1087 = vmatpush.bf16.msrb.mxu1 %v1855_v26 }
 0x1d5   : > { %790 = vmatmul.bf16.gmra.mxu3 %v704_v27  ;;  %v642_v29 = vadd.f32 %v641_v28, %v2064_v9  ;;  %v2083_v28 = vperm.slane %v2023_v34, 3 }
 0x1d7   : > { %v675_v32 = vmul.f32 0.2, %v642_v29 }
 0x1d9   : > { %v691_v37 = vmax.f32 %v642_v29, %v675_v32 }
 0x1dc   : > { %v643_v31 = vpop.f32.mrf.mxu2 }
 0x1dd   : > { %v644_v33 = vadd.f32 %v643_v31, %v2064_v9 }
 0x1df   : > { %v676_v35 = vmul.f32 0.2, %v644_v33 }
 0x1e1   : > { %v692_v38 = vmax.f32 %v644_v33, %v676_v35  ;;  %v1854_v33 = vld [vmem:[#allocation2 + $0x130] sm:$0xff] }
 0x1e2   : > { %1088 = vmatpush.bf16.msrb.mxu1 %v1854_v33 }
 0x1e3   : > { %v705_v39 = vpack.c.bf16 %v692_v38, %v691_v37 }
 0x1e4   : > { %v646_v40 = vpop.f32.mrf.mxu2 }
 0x1e5   : > { %795 = vmatmul.bf16.gmra.mxu3 %v705_v39  ;;  %v647_v41 = vadd.f32 %v646_v40, %v2064_v9 }
 0x1e7   : > { %v677_v44 = vmul.f32 0.2, %v647_v41 }
 0x1e9   : > { %v693_v47 = vmax.f32 %v647_v41, %v677_v44 }
 0x1ec   : > { %v648_v43 = vpop.f32.mrf.mxu2 }
 0x1ed   : > { %v649_v45 = vadd.f32 %v648_v43, %v2064_v9 }
 0x1ef   : > { %v678_v46 = vmul.f32 0.2, %v649_v45 }
 0x1f1   : > { %v694_v48 = vmax.f32 %v649_v45, %v678_v46  ;;  %v1853_v45 = vld [vmem:[#allocation2 + $0x128] sm:$0xff] }
 0x1f2   : > { %1089 = vmatpush.bf16.msrb.mxu1 %v1853_v45 }
 0x1f3   : > { %v706_v49 = vpack.c.bf16 %v694_v48, %v693_v47 }
 0x1f4   : > { %v651_v50 = vpop.f32.mrf.mxu2 }
 0x1f5   : > { %800 = vmatmul.bf16.gmra.mxu3 %v706_v49  ;;  %v652_v51 = vadd.f32 %v651_v50, %v2064_v9 }
 0x1f7   : > { %v679_v54 = vmul.f32 0.2, %v652_v51 }
 0x1f9   : > { %v695_v58 = vmax.f32 %v652_v51, %v679_v54 }
 0x1fc   : > { %v653_v53 = vpop.f32.mrf.mxu2 }
 0x1fd   : > { %v654_v56 = vadd.f32 %v653_v53, %v2064_v9 }
 0x1ff   : > { %v680_v57 = vmul.f32 0.2, %v654_v56 }
 0x201   : > { %v696_v59 = vmax.f32 %v654_v56, %v680_v57 }
 0x203   : > { %v707_v60 = vpack.c.bf16 %v696_v59, %v695_v58  ;;  %v1852_v58 = vld [vmem:[#allocation2 + $0x120] sm:$0xff] }
 0x204   : > { %v656_v61 = vpop.f32.mrf.mxu2  ;;  %1090 = vmatpush.bf16.msrb.mxu1 %v1852_v58 }
 0x205   : > { %805 = vmatmul.bf16.gmra.mxu3 %v707_v60  ;;  %v657_v36 = vadd.f32 %v656_v61, %v2064_v9 }
 0x207   : > { %v681_v0 = vmul.f32 0.2, %v657_v36 }
 0x209   : > { %v697_v3 = vmax.f32 %v657_v36, %v681_v0 }
 0x20c   : > { %v658_v63 = vpop.f32.mrf.mxu2 }
 0x20d   : > { %v659_v1 = vadd.f32 %v658_v63, %v2064_v9 }
 0x20f   : > { %v682_v2 = vmul.f32 0.2, %v659_v1 }
 0x211   : > { %v698_v4 = vmax.f32 %v659_v1, %v682_v2 }
 0x213   : > { %v708_v5 = vpack.c.bf16 %v698_v4, %v697_v3  ;;  %v1851_v3 = vld [vmem:[#allocation2 + $0x118] sm:$0xff] }
 0x214   : > { %v661_v6 = vpop.f32.mrf.mxu2  ;;  %1091 = vmatpush.bf16.msrb.mxu1 %v1851_v3 }
 0x215   : > { %810 = vmatmul.bf16.gmra.mxu3 %v708_v5  ;;  %v662_v8 = vadd.f32 %v661_v6, %v2064_v9 }
 0x217   : > { %v683_v11 = vmul.f32 0.2, %v662_v8 }
 0x219   : > { %v699_v13 = vmax.f32 %v662_v8, %v683_v11 }
 0x21c   : > { %v663_v10 = vpop.f32.mrf.mxu2 }
 0x21d   : > { %v664_v12 = vadd.f32 %v663_v10, %v2064_v9 }
 0x21f   : > { %v684_v55 = vmul.f32 0.2, %v664_v12 }
 0x221   : > { %v700_v14 = vmax.f32 %v664_v12, %v684_v55 }
 0x223   : > { %v709_v15 = vpack.c.bf16 %v700_v14, %v699_v13  ;;  %v1850_v13 = vld [vmem:[#allocation2 + $0x110] sm:$0xff] }
 0x224   : > { %v666_v16 = vpop.f32.mrf.mxu2  ;;  %1092 = vmatpush.bf16.msrb.mxu1 %v1850_v13 }
 0x225   : > { %815 = vmatmul.bf16.gmra.mxu3 %v709_v15  ;;  %v667_v17 = vadd.f32 %v666_v16, %v2064_v9 }
 0x227   : > { %v685_v19 = vmul.f32 0.2, %v667_v17 }
 0x229   : > { %v701_v23 = vmax.f32 %v667_v17, %v685_v19 }
 0x22c   : > { %v668_v18 = vpop.f32.mrf.mxu2 }
 0x22d   : > { %v669_v20 = vadd.f32 %v668_v18, %v2064_v9 }
 0x22f   : > { %v686_v22 = vmul.f32 0.2, %v669_v20 }
 0x231   : > { %v702_v24 = vmax.f32 %v669_v20, %v686_v22 }
 0x233   : > { %v710_v25 = vpack.c.bf16 %v702_v24, %v701_v23  ;;  %v1849_v23 = vld [vmem:[#allocation2 + $0x108] sm:$0xff] }
 0x234   : > { %1093 = vmatpush.bf16.msrb.mxu1 %v1849_v23 }
 0x235   : > { %820 = vmatmul.bf16.gmra.mxu3 %v710_v25 }
 0x248   : > { %v786_v27 = vpop.f32.mrf.mxu3 }
 0x249   : > { %v787_v29 = vadd.f32 %v786_v27, %v2083_v28 }
 0x24b   : > { %v826_v31 = vmul.f32 0.2, %v787_v29 }
 0x24d   : > { %v842_v35 = vmax.f32 %v787_v29, %v826_v31 }
 0x250   : > { %v788_v30 = vpop.f32.mrf.mxu3 }
 0x251   : > { %v789_v32 = vadd.f32 %v788_v30, %v2083_v28 }
 0x253   : > { %v827_v9 = vmul.f32 0.2, %v789_v32 }
 0x255   : > { %v843_v37 = vmax.f32 %v789_v32, %v827_v9 }
 0x257   : > { %v858_v38 = vpack.c.bf16 %v843_v37, %v842_v35  ;;  %v1848_v37 = vld [vmem:[#allocation2 + $0x100] sm:$0xff] }
 0x258   : > { %v791_v39 = vpop.f32.mrf.mxu3  ;;  %1094 = vmatpush.bf16.msrb.mxu1 %v1848_v37 }
 0x259   : > { %940 = vmatmul.bf16.vlgmr.msrb.gmra.mxu0 %v858_v38  ;;  %v792_v40 = vadd.f32 %v791_v39, %v2083_v28 }
 0x25b   : > { %v828_v42 = vmul.f32 0.2, %v792_v40 }
 0x25d   : > { %v844_v46 = vmax.f32 %v792_v40, %v828_v42 }
 0x260   : > { %v793_v41 = vpop.f32.mrf.mxu3 }
 0x261   : > { %v794_v43 = vadd.f32 %v793_v41, %v2083_v28 }
 0x263   : > { %v829_v44 = vmul.f32 0.2, %v794_v43 }
 0x265   : > { %v845_v47 = vmax.f32 %v794_v43, %v829_v44 }
 0x267   : > { %v859_v48 = vpack.c.bf16 %v845_v47, %v844_v46  ;;  %v1863_v46 = vld [vmem:[#allocation2 + $0x178] sm:$0xff] }
 0x268   : > { %v796_v49 = vpop.f32.mrf.mxu3  ;;  %1242 = vmatpush.bf16.msrb.mxu2 %v1863_v46 }
 0x269   : > { %945 = vmatmul.bf16.gmra.mxu0 %v859_v48  ;;  %v797_v50 = vadd.f32 %v796_v49, %v2083_v28  ;;  %v2102_v48 = vperm.slane %v2023_v34, 4 }
 0x26b   : > { %v830_v52 = vmul.f32 0.2, %v797_v50 }
 0x26d   : > { %v846_v56 = vmax.f32 %v797_v50, %v830_v52 }
 0x270   : > { %v798_v51 = vpop.f32.mrf.mxu3 }
 0x271   : > { %v799_v53 = vadd.f32 %v798_v51, %v2083_v28 }
 0x273   : > { %v831_v54 = vmul.f32 0.2, %v799_v53 }
 0x275   : > { %v847_v57 = vmax.f32 %v799_v53, %v831_v54 }
 0x277   : > { %v860_v59 = vpack.c.bf16 %v847_v57, %v846_v56  ;;  %v1862_v56 = vld [vmem:[#allocation2 + $0x170] sm:$0xff] }
 0x278   : > { %v801_v60 = vpop.f32.mrf.mxu3  ;;  %1243 = vmatpush.bf16.msrb.mxu2 %v1862_v56  ;;  %v1856_v56 = vld [vmem:[#allocation2 + $0x140] sm:$0xff] }
 0x279   : > { %950 = vmatmul.bf16.gmra.mxu0 %v860_v59  ;;  %v802_v61 = vadd.f32 %v801_v60, %v2083_v28 }
 0x27b   : > { %v832_v62 = vmul.f32 0.2, %v802_v61 }
 0x27d   : > { %v848_v1 = vmax.f32 %v802_v61, %v832_v62 }
 0x280   : > { %v803_v36 = vpop.f32.mrf.mxu3 }
 0x281   : > { %v804_v63 = vadd.f32 %v803_v36, %v2083_v28 }
 0x283   : > { %v833_v0 = vmul.f32 0.2, %v804_v63 }
 0x285   : > { %v849_v2 = vmax.f32 %v804_v63, %v833_v0 }
 0x287   : > { %v861_v4 = vpack.c.bf16 %v849_v2, %v848_v1  ;;  %v1861_v1 = vld [vmem:[#allocation2 + $0x168] sm:$0xff] }
 0x288   : > { %v806_v5 = vpop.f32.mrf.mxu3  ;;  %1244 = vmatpush.bf16.msrb.mxu2 %v1861_v1  ;;  %v2121_v1 = vperm.slane %v2023_v34, 5 }
 0x289   : > { %955 = vmatmul.bf16.gmra.mxu0 %v861_v4  ;;  %v807_v6 = vadd.f32 %v806_v5, %v2083_v28 }
 0x28b   : > { %v834_v8 = vmul.f32 0.2, %v807_v6 }
 0x28d   : > { %v850_v12 = vmax.f32 %v807_v6, %v834_v8 }
 0x290   : > { %v808_v7 = vpop.f32.mrf.mxu3 }
 0x291   : > { %v809_v10 = vadd.f32 %v808_v7, %v2083_v28 }
 0x293   : > { %v835_v11 = vmul.f32 0.2, %v809_v10 }
 0x295   : > { %v851_v55 = vmax.f32 %v809_v10, %v835_v11 }
 0x297   : > { %v862_v14 = vpack.c.bf16 %v851_v55, %v850_v12  ;;  %v1860_v12 = vld [vmem:[#allocation2 + $0x160] sm:$0xff] }
 0x298   : > { %v811_v15 = vpop.f32.mrf.mxu3  ;;  %1245 = vmatpush.bf16.msrb.mxu2 %v1860_v12  ;;  %v1870_v12 = vld [vmem:[%s2251_s3 + $0x30] sm:$0xff] }
 0x299   : > { %960 = vmatmul.bf16.gmra.mxu0 %v862_v14  ;;  %v812_v16 = vadd.f32 %v811_v15, %v2083_v28 }
 0x29b   : > { %v836_v18 = vmul.f32 0.2, %v812_v16 }
 0x29d   : > { %v852_v21 = vmax.f32 %v812_v16, %v836_v18 }
 0x2a0   : > { %v813_v17 = vpop.f32.mrf.mxu3 }
 0x2a1   : > { %v814_v19 = vadd.f32 %v813_v17, %v2083_v28 }
 0x2a3   : > { %v837_v20 = vmul.f32 0.2, %v814_v19 }
 0x2a5   : > { %v853_v22 = vmax.f32 %v814_v19, %v837_v20 }
 0x2a7   : > { %v863_v24 = vpack.c.bf16 %v853_v22, %v852_v21  ;;  %v1859_v21 = vld [vmem:[#allocation2 + $0x158] sm:$0xff] }
 0x2a8   : > { %v816_v25 = vpop.f32.mrf.mxu3  ;;  %1246 = vmatpush.bf16.msrb.mxu2 %v1859_v21  ;;  %v1869_v21 = vld [vmem:[%s2251_s3 + $0x28] sm:$0xff] }
 0x2a9   : > { %965 = vmatmul.bf16.gmra.mxu0 %v863_v24  ;;  %v817_v26 = vadd.f32 %v816_v25, %v2083_v28 }
 0x2ab   : > { %v838_v29 = vmul.f32 0.2, %v817_v26 }
 0x2ad   : > { %v854_v32 = vmax.f32 %v817_v26, %v838_v29 }
 0x2b0   : > { %v818_v27 = vpop.f32.mrf.mxu3 }
 0x2b1   : > { %v819_v30 = vadd.f32 %v818_v27, %v2083_v28 }
 0x2b3   : > { %v839_v31 = vmul.f32 0.2, %v819_v30 }
 0x2b5   : > { %v855_v9 = vmax.f32 %v819_v30, %v839_v31 }
 0x2b7   : > { %v864_v33 = vpack.c.bf16 %v855_v9, %v854_v32  ;;  %v1858_v32 = vld [vmem:[#allocation2 + $0x150] sm:$0xff] }
 0x2b8   : > { %v821_v35 = vpop.f32.mrf.mxu3  ;;  %1247 = vmatpush.bf16.msrb.mxu2 %v1858_v32  ;;  %v1868_v32 = vld [vmem:[%s2251_s3 + $0x20] sm:$0xff] }
 0x2b9   : > { %970 = vmatmul.bf16.gmra.mxu0 %v864_v33  ;;  %v822_v38 = vadd.f32 %v821_v35, %v2083_v28 }
 0x2bb   : > { %v840_v40 = vmul.f32 0.2, %v822_v38 }
 0x2bd   : > { %v856_v43 = vmax.f32 %v822_v38, %v840_v40 }
 0x2c0   : > { %v823_v39 = vpop.f32.mrf.mxu3 }
 0x2c1   : > { %v824_v41 = vadd.f32 %v823_v39, %v2083_v28 }
 0x2c3   : > { %v841_v42 = vmul.f32 0.2, %v824_v41 }
 0x2c5   : > { %v857_v44 = vmax.f32 %v824_v41, %v841_v42 }
 0x2c7   : > { %v865_v45 = vpack.c.bf16 %v857_v44, %v856_v43  ;;  %v1857_v43 = vld [vmem:[#allocation2 + $0x148] sm:$0xff] }
 0x2c8   : > { %1248 = vmatpush.bf16.msrb.mxu2 %v1857_v43  ;;  %v1867_v43 = vld [vmem:[%s2251_s3 + $0x18] sm:$0xff] }
 0x2c9   : > { %975 = vmatmul.bf16.gmra.mxu0 %v865_v45 }
 0x2cc   : > { %1249 = vmatpush.bf16.msrb.mxu2 %v1856_v56 }
 0x2d6   : > { %v941_v47 = vpop.f32.mrf.mxu0 }
 0x2d7   : > { %v942_v49 = vadd.f32 %v941_v47, %v2102_v48 }
 0x2d9   : > { %v981_v51 = vmul.f32 0.2, %v942_v49 }
 0x2db   : > { %v997_v54 = vmax.f32 %v942_v49, %v981_v51 }
 0x2de   : > { %v943_v50 = vpop.f32.mrf.mxu0 }
 0x2df   : > { %v944_v52 = vadd.f32 %v943_v50, %v2102_v48 }
 0x2e1   : > { %v982_v53 = vmul.f32 0.2, %v944_v52 }
 0x2e3   : > { %v998_v28 = vmax.f32 %v944_v52, %v982_v53 }
 0x2e5   : > { %v1013_v57 = vpack.c.bf16 %v998_v28, %v997_v54 }
 0x2e6   : > { %v946_v58 = vpop.f32.mrf.mxu0 }
 0x2e7   : > { %1095 = vmatmul.bf16.vlgmr.msrb.gmra.mxu1 %v1013_v57  ;;  %v947_v59 = vadd.f32 %v946_v58, %v2102_v48 }
 0x2e9   : > { %v983_v61 = vmul.f32 0.2, %v947_v59 }
 0x2eb   : > { %v999_v63 = vmax.f32 %v947_v59, %v983_v61 }
 0x2ee   : > { %v948_v60 = vpop.f32.mrf.mxu0 }
 0x2ef   : > { %v949_v36 = vadd.f32 %v948_v60, %v2102_v48 }
 0x2f1   : > { %v984_v62 = vmul.f32 0.2, %v949_v36 }
 0x2f3   : > { %v1000_v0 = vmax.f32 %v949_v36, %v984_v62 }
 0x2f5   : > { %v1014_v2 = vpack.c.bf16 %v1000_v0, %v999_v63 }
 0x2f6   : > { %v951_v3 = vpop.f32.mrf.mxu0 }
 0x2f7   : > { %1100 = vmatmul.bf16.gmra.mxu1 %v1014_v2  ;;  %v952_v4 = vadd.f32 %v951_v3, %v2102_v48  ;;  %v1871_v3 = vld [vmem:[%s2251_s3 + $0x38] sm:$0xff] }
 0x2f8   : > { %1396 = vmatpush.bf16.msrb.mxu3 %v1871_v3 }
 0x2f9   : > { %v985_v6 = vmul.f32 0.2, %v952_v4 }
 0x2fb   : > { %v1001_v10 = vmax.f32 %v952_v4, %v985_v6 }
 0x2fc   : > { %1397 = vmatpush.bf16.msrb.mxu3 %v1870_v12  ;;  %v1864_v12 = vld [vmem:[%s2251_s3] sm:$0xff] }
 0x2fe   : > { %v953_v5 = vpop.f32.mrf.mxu0 }
 0x2ff   : > { %v954_v7 = vadd.f32 %v953_v5, %v2102_v48 }
 0x300   : > { %1398 = vmatpush.bf16.msrb.mxu3 %v1869_v21 }
 0x301   : > { %v986_v8 = vmul.f32 0.2, %v954_v7 }
 0x303   : > { %v1002_v11 = vmax.f32 %v954_v7, %v986_v8 }
 0x304   : > { %1399 = vmatpush.bf16.msrb.mxu3 %v1868_v32 }
 0x305   : > { %v1015_v55 = vpack.c.bf16 %v1002_v11, %v1001_v10 }
 0x306   : > { %v956_v13 = vpop.f32.mrf.mxu0 }
 0x307   : > { %1105 = vmatmul.bf16.gmra.mxu1 %v1015_v55  ;;  %v957_v14 = vadd.f32 %v956_v13, %v2102_v48 }
 0x308   : > { %1400 = vmatpush.bf16.msrb.mxu3 %v1867_v43 }
 0x309   : > { %v987_v16 = vmul.f32 0.2, %v957_v14 }
 0x30b   : > { %v1003_v19 = vmax.f32 %v957_v14, %v987_v16 }
 0x30e   : > { %v958_v15 = vpop.f32.mrf.mxu0 }
 0x30f   : > { %v959_v17 = vadd.f32 %v958_v15, %v2102_v48 }
 0x311   : > { %v988_v18 = vmul.f32 0.2, %v959_v17 }
 0x313   : > { %v1004_v20 = vmax.f32 %v959_v17, %v988_v18 }
 0x315   : > { %v1016_v22 = vpack.c.bf16 %v1004_v20, %v1003_v19 }
 0x316   : > { %v961_v23 = vpop.f32.mrf.mxu0 }
 0x317   : > { %1110 = vmatmul.bf16.gmra.mxu1 %v1016_v22  ;;  %v962_v24 = vadd.f32 %v961_v23, %v2102_v48 }
 0x319   : > { %v989_v26 = vmul.f32 0.2, %v962_v24 }
 0x31b   : > { %v1005_v30 = vmax.f32 %v962_v24, %v989_v26 }
 0x31e   : > { %v963_v25 = vpop.f32.mrf.mxu0 }
 0x31f   : > { %v964_v27 = vadd.f32 %v963_v25, %v2102_v48 }
 0x321   : > { %v990_v29 = vmul.f32 0.2, %v964_v27 }
 0x323   : > { %v1006_v31 = vmax.f32 %v964_v27, %v990_v29 }
 0x325   : > { %v1017_v9 = vpack.c.bf16 %v1006_v31, %v1005_v30 }
 0x326   : > { %v966_v33 = vpop.f32.mrf.mxu0 }
 0x327   : > { %1115 = vmatmul.bf16.gmra.mxu1 %v1017_v9  ;;  %v967_v35 = vadd.f32 %v966_v33, %v2102_v48 }
 0x329   : > { %v991_v38 = vmul.f32 0.2, %v967_v35 }
 0x32b   : > { %v1007_v41 = vmax.f32 %v967_v35, %v991_v38 }
 0x32e   : > { %v968_v37 = vpop.f32.mrf.mxu0 }
 0x32f   : > { %v969_v39 = vadd.f32 %v968_v37, %v2102_v48 }
 0x331   : > { %v992_v40 = vmul.f32 0.2, %v969_v39 }
 0x333   : > { %v1008_v42 = vmax.f32 %v969_v39, %v992_v40 }
 0x335   : > { %v1018_v44 = vpack.c.bf16 %v1008_v42, %v1007_v41 }
 0x336   : > { %v971_v45 = vpop.f32.mrf.mxu0 }
 0x337   : > { %1120 = vmatmul.bf16.gmra.mxu1 %v1018_v44  ;;  %v972_v46 = vadd.f32 %v971_v45, %v2102_v48 }
 0x339   : > { %v993_v49 = vmul.f32 0.2, %v972_v46 }
 0x33b   : > { %v1009_v52 = vmax.f32 %v972_v46, %v993_v49 }
 0x33e   : > { %v973_v47 = vpop.f32.mrf.mxu0 }
 0x33f   : > { %v974_v50 = vadd.f32 %v973_v47, %v2102_v48 }
 0x341   : > { %v994_v51 = vmul.f32 0.2, %v974_v50 }
 0x343   : > { %v1010_v53 = vmax.f32 %v974_v50, %v994_v51 }
 0x345   : > { %v1019_v54 = vpack.c.bf16 %v1010_v53, %v1009_v52 }
 0x346   : > { %v976_v28 = vpop.f32.mrf.mxu0 }
 0x347   : > { %1125 = vmatmul.bf16.gmra.mxu1 %v1019_v54  ;;  %v977_v57 = vadd.f32 %v976_v28, %v2102_v48  ;;  %v1866_v54 = vld [vmem:[%s2251_s3 + $0x10] sm:$0xff] }
 0x348   : > { %1401 = vmatpush.bf16.msrb.mxu3 %v1866_v54 }
 0x349   : > { %v995_v59 = vmul.f32 0.2, %v977_v57 }
 0x34b   : > { %v1011_v36 = vmax.f32 %v977_v57, %v995_v59 }
 0x34e   : > { %v978_v58 = vpop.f32.mrf.mxu0 }
 0x34f   : > { %v979_v60 = vadd.f32 %v978_v58, %v2102_v48 }
 0x351   : > { %v996_v61 = vmul.f32 0.2, %v979_v60 }
 0x353   : > { %v1012_v62 = vmax.f32 %v979_v60, %v996_v61 }
 0x355   : > { %v1020_v63 = vpack.c.bf16 %v1012_v62, %v1011_v36  ;;  %v1865_v62 = vld [vmem:[%s2251_s3 + $0x8] sm:$0xff] }
 0x356   : > { %1402 = vmatpush.bf16.msrb.mxu3 %v1865_v62 }
 0x357   : > { %1130 = vmatmul.bf16.gmra.mxu1 %v1020_v63 }
 0x35a   : > { %1403 = vmatpush.bf16.msrb.mxu3 %v1864_v12 }
 0x364   : > { %v1096_v0 = vpop.f32.mrf.mxu1 }
 0x365   : > { %v1097_v2 = vadd.f32 %v1096_v0, %v2121_v1 }
 0x367   : > { %v1136_v5 = vmul.f32 0.2, %v1097_v2 }
 0x369   : > { %v1152_v7 = vmax.f32 %v1097_v2, %v1136_v5 }
 0x36c   : > { %v1098_v4 = vpop.f32.mrf.mxu1 }
 0x36d   : > { %v1099_v48 = vadd.f32 %v1098_v4, %v2121_v1 }
 0x36f   : > { %v1137_v6 = vmul.f32 0.2, %v1099_v48 }
 0x371   : > { %v1153_v8 = vmax.f32 %v1099_v48, %v1137_v6 }
 0x373   : > { %v1168_v10 = vpack.c.bf16 %v1153_v8, %v1152_v7 }
 0x374   : > { %v1101_v11 = vpop.f32.mrf.mxu1 }
 0x375   : > { %1250 = vmatmul.bf16.vlgmr.msrb.gmra.mxu2 %v1168_v10  ;;  %v1102_v34 = vadd.f32 %v1101_v11, %v2121_v1 }
 0x377   : > { %v1138_v13 = vmul.f32 0.2, %v1102_v34 }
 0x379   : > { %v1154_v16 = vmax.f32 %v1102_v34, %v1138_v13 }
 0x37c   : > { %v1103_v55 = vpop.f32.mrf.mxu1 }
 0x37d   : > { %v1104_v14 = vadd.f32 %v1103_v55, %v2121_v1 }
 0x37f   : > { %v1139_v15 = vmul.f32 0.2, %v1104_v14 }
 0x381   : > { %v1155_v17 = vmax.f32 %v1104_v14, %v1139_v15 }
 0x383   : > { %v1169_v18 = vpack.c.bf16 %v1155_v17, %v1154_v16  ;;  %v2166_v17 = vld [vmem:[%s2252_s4] sm:$0xff] }
 0x384   : > { %v1106_v19 = vpop.f32.mrf.mxu1 }
 0x385   : > { %1255 = vmatmul.bf16.gmra.mxu2 %v1169_v18  ;;  %v1107_v20 = vadd.f32 %v1106_v19, %v2121_v1  ;;  %v2169_v18 = vperm.slane %v2166_v17, 6 }
 0x387   : > { %v1140_v23 = vmul.f32 0.2, %v1107_v20 }
 0x389   : > { %v1156_v26 = vmax.f32 %v1107_v20, %v1140_v23 }
 0x38c   : > { %v1108_v22 = vpop.f32.mrf.mxu1 }
 0x38d   : > { %v1109_v24 = vadd.f32 %v1108_v22, %v2121_v1 }
 0x38f   : > { %v1141_v25 = vmul.f32 0.2, %v1109_v24 }
 0x391   : > { %v1157_v27 = vmax.f32 %v1109_v24, %v1141_v25 }
 0x393   : > { %v1170_v29 = vpack.c.bf16 %v1157_v27, %v1156_v26 }
 0x394   : > { %v1111_v30 = vpop.f32.mrf.mxu1 }
 0x395   : > { %1260 = vmatmul.bf16.gmra.mxu2 %v1170_v29  ;;  %v1112_v31 = vadd.f32 %v1111_v30, %v2121_v1 }
 0x397   : > { %v1142_v33 = vmul.f32 0.2, %v1112_v31 }
 0x399   : > { %v1158_v38 = vmax.f32 %v1112_v31, %v1142_v33 }
 0x39c   : > { %v1113_v9 = vpop.f32.mrf.mxu1 }
 0x39d   : > { %v1114_v35 = vadd.f32 %v1113_v9, %v2121_v1 }
 0x39f   : > { %v1143_v37 = vmul.f32 0.2, %v1114_v35 }
 0x3a1   : > { %v1159_v39 = vmax.f32 %v1114_v35, %v1143_v37 }
 0x3a3   : > { %v1171_v40 = vpack.c.bf16 %v1159_v39, %v1158_v38 }
 0x3a4   : > { %v1116_v41 = vpop.f32.mrf.mxu1 }
 0x3a5   : > { %1265 = vmatmul.bf16.gmra.mxu2 %v1171_v40  ;;  %v1117_v42 = vadd.f32 %v1116_v41, %v2121_v1 }
 0x3a7   : > { %v1144_v45 = vmul.f32 0.2, %v1117_v42 }
 0x3a9   : > { %v1160_v49 = vmax.f32 %v1117_v42, %v1144_v45 }
 0x3ac   : > { %v1118_v44 = vpop.f32.mrf.mxu1 }
 0x3ad   : > { %v1119_v46 = vadd.f32 %v1118_v44, %v2121_v1 }
 0x3af   : > { %v1145_v47 = vmul.f32 0.2, %v1119_v46 }
 0x3b1   : > { %v1161_v50 = vmax.f32 %v1119_v46, %v1145_v47 }
 0x3b3   : > { %v1172_v51 = vpack.c.bf16 %v1161_v50, %v1160_v49 }
 0x3b4   : > { %v1121_v52 = vpop.f32.mrf.mxu1 }
 0x3b5   : > { %1270 = vmatmul.bf16.gmra.mxu2 %v1172_v51  ;;  %v1122_v53 = vadd.f32 %v1121_v52, %v2121_v1 }
 0x3b7   : > { %v1146_v56 = vmul.f32 0.2, %v1122_v53 }
 0x3b9   : > { %v1162_v59 = vmax.f32 %v1122_v53, %v1146_v56 }
 0x3bc   : > { %v1123_v28 = vpop.f32.mrf.mxu1 }
 0x3bd   : > { %v1124_v57 = vadd.f32 %v1123_v28, %v2121_v1 }
 0x3bf   : > { %v1147_v58 = vmul.f32 0.2, %v1124_v57 }
 0x3c1   : > { %v1163_v60 = vmax.f32 %v1124_v57, %v1147_v58 }
 0x3c3   : > { %v1173_v61 = vpack.c.bf16 %v1163_v60, %v1162_v59 }
 0x3c4   : > { %v1126_v36 = vpop.f32.mrf.mxu1 }
 0x3c5   : > { %1275 = vmatmul.bf16.gmra.mxu2 %v1173_v61  ;;  %v1127_v63 = vadd.f32 %v1126_v36, %v2121_v1 }
 0x3c7   : > { %v1148_v2 = vmul.f32 0.2, %v1127_v63 }
 0x3c9   : > { %v1164_v5 = vmax.f32 %v1127_v63, %v1148_v2 }
 0x3cc   : > { %v1128_v0 = vpop.f32.mrf.mxu1 }
 0x3cd   : > { %v1129_v3 = vadd.f32 %v1128_v0, %v2121_v1 }
 0x3cf   : > { %v1149_v4 = vmul.f32 0.2, %v1129_v3 }
 0x3d1   : > { %v1165_v48 = vmax.f32 %v1129_v3, %v1149_v4 }
 0x3d3   : > { %v1174_v6 = vpack.c.bf16 %v1165_v48, %v1164_v5 }
 0x3d4   : > { %v1131_v7 = vpop.f32.mrf.mxu1 }
 0x3d5   : > { %1280 = vmatmul.bf16.gmra.mxu2 %v1174_v6  ;;  %v1132_v8 = vadd.f32 %v1131_v7, %v2121_v1 }
 0x3d7   : > { %v1150_v11 = vmul.f32 0.2, %v1132_v8 }
 0x3d9   : > { %v1166_v13 = vmax.f32 %v1132_v8, %v1150_v11 }
 0x3dc   : > { %v1133_v10 = vpop.f32.mrf.mxu1 }
 0x3dd   : > { %v1134_v34 = vadd.f32 %v1133_v10, %v2121_v1 }
 0x3df   : > { %v1151_v55 = vmul.f32 0.2, %v1134_v34 }
 0x3e1   : > { %v1167_v14 = vmax.f32 %v1134_v34, %v1151_v55 }
 0x3e3   : > { %v1175_v15 = vpack.c.bf16 %v1167_v14, %v1166_v13 }
 0x3e5   : > { %1285 = vmatmul.bf16.gmra.mxu2 %v1175_v15 }
 0x3f8   : > { %v1251_v16 = vpop.f32.mrf.mxu2 }
 0x3f9   : > { %v1252_v1 = vadd.f32 %v1251_v16, %v2169_v18 }
 0x3fb   : > { %v1291_v20 = vmul.f32 0.2, %v1252_v1 }
 0x3fd   : > { %v1307_v23 = vmax.f32 %v1252_v1, %v1291_v20 }
 0x400   : > { %v1253_v19 = vpop.f32.mrf.mxu2 }
 0x401   : > { %v1254_v21 = vadd.f32 %v1253_v19, %v2169_v18 }
 0x403   : > { %v1292_v22 = vmul.f32 0.2, %v1254_v21 }
 0x405   : > { %v1308_v24 = vmax.f32 %v1254_v21, %v1292_v22 }
 0x407   : > { %v1323_v25 = vpack.c.bf16 %v1308_v24, %v1307_v23 }
 0x408   : > { %v1256_v26 = vpop.f32.mrf.mxu2 }
 0x409   : > { %1404 = vmatmul.bf16.vlgmr.msrb.gmra.mxu3 %v1323_v25  ;;  %v1257_v27 = vadd.f32 %v1256_v26, %v2169_v18 }
 0x40b   : > { %v1293_v30 = vmul.f32 0.2, %v1257_v27 }
 0x40d   : > { %v1309_v9 = vmax.f32 %v1257_v27, %v1293_v30  ;;  %v2188_v27 = vperm.slane %v2166_v17, 7 }
 0x410   : > { %v1258_v29 = vpop.f32.mrf.mxu2 }
 0x411   : > { %v1259_v31 = vadd.f32 %v1258_v29, %v2169_v18 }
 0x413   : > { %v1294_v32 = vmul.f32 0.2, %v1259_v31 }
 0x415   : > { %v1310_v33 = vmax.f32 %v1259_v31, %v1294_v32 }
 0x417   : > { %v1324_v35 = vpack.c.bf16 %v1310_v33, %v1309_v9 }
 0x418   : > { %v1261_v37 = vpop.f32.mrf.mxu2 }
 0x419   : > { %1409 = vmatmul.bf16.gmra.mxu3 %v1324_v35  ;;  %v1262_v38 = vadd.f32 %v1261_v37, %v2169_v18 }
 0x41b   : > { %v1295_v40 = vmul.f32 0.2, %v1262_v38 }
 0x41d   : > { %v1311_v43 = vmax.f32 %v1262_v38, %v1295_v40 }
 0x420   : > { %v1263_v39 = vpop.f32.mrf.mxu2 }
 0x421   : > { %v1264_v41 = vadd.f32 %v1263_v39, %v2169_v18 }
 0x423   : > { %v1296_v42 = vmul.f32 0.2, %v1264_v41 }
 0x425   : > { %v1312_v44 = vmax.f32 %v1264_v41, %v1296_v42 }
 0x427   : > { %v1325_v45 = vpack.c.bf16 %v1312_v44, %v1311_v43 }
 0x428   : > { %v1266_v46 = vpop.f32.mrf.mxu2 }
 0x429   : > { %1414 = vmatmul.bf16.gmra.mxu3 %v1325_v45  ;;  %v1267_v47 = vadd.f32 %v1266_v46, %v2169_v18 }
 0x42b   : > { %v1297_v50 = vmul.f32 0.2, %v1267_v47 }
 0x42d   : > { %v1313_v53 = vmax.f32 %v1267_v47, %v1297_v50 }
 0x430   : > { %v1268_v49 = vpop.f32.mrf.mxu2 }
 0x431   : > { %v1269_v51 = vadd.f32 %v1268_v49, %v2169_v18 }
 0x433   : > { %v1298_v52 = vmul.f32 0.2, %v1269_v51 }
 0x435   : > { %v1314_v54 = vmax.f32 %v1269_v51, %v1298_v52 }
 0x437   : > { %v1326_v28 = vpack.c.bf16 %v1314_v54, %v1313_v53 }
 0x438   : > { %v1271_v56 = vpop.f32.mrf.mxu2 }
 0x439   : > { %1419 = vmatmul.bf16.gmra.mxu3 %v1326_v28  ;;  %v1272_v57 = vadd.f32 %v1271_v56, %v2169_v18 }
 0x43b   : > { %v1299_v59 = vmul.f32 0.2, %v1272_v57 }
 0x43d   : > { %v1315_v36 = vmax.f32 %v1272_v57, %v1299_v59 }
 0x440   : > { %v1273_v58 = vpop.f32.mrf.mxu2 }
 0x441   : > { %v1274_v60 = vadd.f32 %v1273_v58, %v2169_v18 }
 0x443   : > { %v1300_v61 = vmul.f32 0.2, %v1274_v60 }
 0x445   : > { %v1316_v62 = vmax.f32 %v1274_v60, %v1300_v61 }
 0x447   : > { %v1327_v63 = vpack.c.bf16 %v1316_v62, %v1315_v36 }
 0x448   : > { %v1276_v0 = vpop.f32.mrf.mxu2 }
 0x449   : > { %1424 = vmatmul.bf16.gmra.mxu3 %v1327_v63  ;;  %v1277_v2 = vadd.f32 %v1276_v0, %v2169_v18 }
 0x44b   : > { %v1301_v4 = vmul.f32 0.2, %v1277_v2 }
 0x44d   : > { %v1317_v6 = vmax.f32 %v1277_v2, %v1301_v4 }
 0x450   : > { %v1278_v3 = vpop.f32.mrf.mxu2 }
 0x451   : > { %v1279_v5 = vadd.f32 %v1278_v3, %v2169_v18 }
 0x453   : > { %v1302_v48 = vmul.f32 0.2, %v1279_v5 }
 0x455   : > { %v1318_v7 = vmax.f32 %v1279_v5, %v1302_v48 }
 0x457   : > { %v1328_v8 = vpack.c.bf16 %v1318_v7, %v1317_v6 }
 0x458   : > { %v1281_v10 = vpop.f32.mrf.mxu2 }
 0x459   : > { %1429 = vmatmul.bf16.gmra.mxu3 %v1328_v8  ;;  %v1282_v11 = vadd.f32 %v1281_v10, %v2169_v18 }
 0x45b   : > { %v1303_v12 = vmul.f32 0.2, %v1282_v11 }
 0x45d   : > { %v1319_v14 = vmax.f32 %v1282_v11, %v1303_v12 }
 0x460   : > { %v1283_v34 = vpop.f32.mrf.mxu2 }
 0x461   : > { %v1284_v55 = vadd.f32 %v1283_v34, %v2169_v18 }
 0x463   : > { %v1304_v13 = vmul.f32 0.2, %v1284_v55 }
 0x465   : > { %v1320_v15 = vmax.f32 %v1284_v55, %v1304_v13 }
 0x467   : > { %v1329_v16 = vpack.c.bf16 %v1320_v15, %v1319_v14 }
 0x468   : > { %v1286_v1 = vpop.f32.mrf.mxu2 }
 0x469   : > { %1434 = vmatmul.bf16.gmra.mxu3 %v1329_v16  ;;  %v1287_v19 = vadd.f32 %v1286_v1, %v2169_v18 }
 0x46b   : > { %v1305_v21 = vmul.f32 0.2, %v1287_v19 }
 0x46d   : > { %v1321_v24 = vmax.f32 %v1287_v19, %v1305_v21 }
 0x470   : > { %v1288_v20 = vpop.f32.mrf.mxu2 }
 0x471   : > { %v1289_v22 = vadd.f32 %v1288_v20, %v2169_v18 }
 0x473   : > { %v1306_v23 = vmul.f32 0.2, %v1289_v22 }
 0x475   : > { %v1322_v25 = vmax.f32 %v1289_v22, %v1306_v23 }
 0x477   : > { %v1330_v26 = vpack.c.bf16 %v1322_v25, %v1321_v24 }
 0x479   : > { %1439 = vmatmul.bf16.gmra.mxu3 %v1330_v26 }
 0x48c   : > { %v1405_v29 = vpop.f32.mrf.mxu3 }
 0x48d   : > { %v1406_v30 = vadd.f32 %v1405_v29, %v2188_v27 }
 0x48f   : > { %v1445_v31 = vmul.f32 0.2, %v1406_v30 }
 0x491   : > { %v1461_v18 = vmax.f32 %v1406_v30, %v1445_v31 }
 0x493   : > { %1477 = vst.msk [vmem:[%s2196_s11] sm:$0xff] %vm288_vm0, %v1461_v18 }
 0x494   : > { %v1407_v32 = vpop.f32.mrf.mxu3 }
 0x495   : > { %v1408_v17 = vadd.f32 %v1407_v32, %v2188_v27 }
 0x497   : > { %v1446_v9 = vmul.f32 0.2, %v1408_v17 }
 0x499   : > { %v1462_v33 = vmax.f32 %v1408_v17, %v1446_v9 }
 0x49b   : > { %1478 = vst.msk [vmem:[%s2196_s11 + $0x8] sm:$0xff] %vm288_vm0, %v1462_v33 }
 0x49c   : > { %v1410_v35 = vpop.f32.mrf.mxu3 }
 0x49d   : > { %v1411_v37 = vadd.f32 %v1410_v35, %v2188_v27 }
 0x49f   : > { %v1447_v38 = vmul.f32 0.2, %v1411_v37 }
 0x4a1   : > { %v1463_v39 = vmax.f32 %v1411_v37, %v1447_v38 }
 0x4a3   : > { %1479 = vst.msk [vmem:[%s2196_s11 + $0x10] sm:$0xff] %vm288_vm0, %v1463_v39 }
 0x4a4   : > { %v1412_v40 = vpop.f32.mrf.mxu3 }
 0x4a5   : > { %v1413_v41 = vadd.f32 %v1412_v40, %v2188_v27 }
 0x4a7   : > { %v1448_v42 = vmul.f32 0.2, %v1413_v41 }
 0x4a9   : > { %v1464_v43 = vmax.f32 %v1413_v41, %v1448_v42 }
 0x4ab   : > { %1480 = vst.msk [vmem:[%s2196_s11 + $0x18] sm:$0xff] %vm288_vm0, %v1464_v43 }
 0x4ac   : > { %v1415_v44 = vpop.f32.mrf.mxu3 }
 0x4ad   : > { %v1416_v45 = vadd.f32 %v1415_v44, %v2188_v27 }
 0x4af   : > { %v1449_v46 = vmul.f32 0.2, %v1416_v45 }
 0x4b1   : > { %v1465_v47 = vmax.f32 %v1416_v45, %v1449_v46 }
 0x4b3   : > { %1481 = vst.msk [vmem:[%s2196_s11 + $0x20] sm:$0xff] %vm288_vm0, %v1465_v47 }
 0x4b4   : > { %v1417_v49 = vpop.f32.mrf.mxu3 }
 0x4b5   : > { %v1418_v50 = vadd.f32 %v1417_v49, %v2188_v27 }
 0x4b7   : > { %v1450_v51 = vmul.f32 0.2, %v1418_v50 }
 0x4b9   : > { %v1466_v52 = vmax.f32 %v1418_v50, %v1450_v51 }
 0x4bb   : > { %1482 = vst.msk [vmem:[%s2196_s11 + $0x28] sm:$0xff] %vm288_vm0, %v1466_v52 }
 0x4bc   : > { %v1420_v53 = vpop.f32.mrf.mxu3 }
 0x4bd   : > { %v1421_v54 = vadd.f32 %v1420_v53, %v2188_v27 }
 0x4bf   : > { %v1451_v28 = vmul.f32 0.2, %v1421_v54 }
 0x4c1   : > { %v1467_v56 = vmax.f32 %v1421_v54, %v1451_v28 }
 0x4c3   : > { %1483 = vst.msk [vmem:[%s2196_s11 + $0x30] sm:$0xff] %vm288_vm0, %v1467_v56 }
 0x4c4   : > { %v1422_v57 = vpop.f32.mrf.mxu3 }
 0x4c5   : > { %v1423_v58 = vadd.f32 %v1422_v57, %v2188_v27 }
 0x4c7   : > { %v1452_v59 = vmul.f32 0.2, %v1423_v58 }
 0x4c9   : > { %v1468_v60 = vmax.f32 %v1423_v58, %v1452_v59 }
 0x4cb   : > { %1484 = vst.msk [vmem:[%s2196_s11 + $0x38] sm:$0xff] %vm288_vm0, %v1468_v60 }
 0x4cc   : > { %v1425_v61 = vpop.f32.mrf.mxu3 }
 0x4cd   : > { %v1426_v36 = vadd.f32 %v1425_v61, %v2188_v27 }
 0x4cf   : > { %v1453_v62 = vmul.f32 0.2, %v1426_v36 }
 0x4d1   : > { %v1469_v63 = vmax.f32 %v1426_v36, %v1453_v62 }
 0x4d3   : > { %1485 = vst.msk [vmem:[%s2196_s11 + $0x40] sm:$0xff] %vm288_vm0, %v1469_v63 }
 0x4d4   : > { %v1427_v0 = vpop.f32.mrf.mxu3 }
 0x4d5   : > { %v1428_v2 = vadd.f32 %v1427_v0, %v2188_v27 }
 0x4d7   : > { %v1454_v3 = vmul.f32 0.2, %v1428_v2 }
 0x4d9   : > { %v1470_v4 = vmax.f32 %v1428_v2, %v1454_v3 }
 0x4db   : > { %1486 = vst.msk [vmem:[%s2196_s11 + $0x48] sm:$0xff] %vm288_vm0, %v1470_v4 }
 0x4dc   : > { %v1430_v5 = vpop.f32.mrf.mxu3 }
 0x4dd   : > { %v1431_v48 = vadd.f32 %v1430_v5, %v2188_v27 }
 0x4df   : > { %v1455_v6 = vmul.f32 0.2, %v1431_v48 }
 0x4e1   : > { %v1471_v7 = vmax.f32 %v1431_v48, %v1455_v6 }
 0x4e3   : > { %1487 = vst.msk [vmem:[%s2196_s11 + $0x50] sm:$0xff] %vm288_vm0, %v1471_v7 }
 0x4e4   : > { %v1432_v8 = vpop.f32.mrf.mxu3 }
 0x4e5   : > { %v1433_v10 = vadd.f32 %v1432_v8, %v2188_v27 }
 0x4e7   : > { %v1456_v11 = vmul.f32 0.2, %v1433_v10 }
 0x4e9   : > { %v1472_v34 = vmax.f32 %v1433_v10, %v1456_v11 }
 0x4eb   : > { %1488 = vst.msk [vmem:[%s2196_s11 + $0x58] sm:$0xff] %vm288_vm0, %v1472_v34 }
 0x4ec   : > { %v1435_v12 = vpop.f32.mrf.mxu3 }
 0x4ed   : > { %v1436_v55 = vadd.f32 %v1435_v12, %v2188_v27 }
 0x4ef   : > { %v1457_v13 = vmul.f32 0.2, %v1436_v55 }
 0x4f1   : > { %v1473_v14 = vmax.f32 %v1436_v55, %v1457_v13 }
 0x4f3   : > { %1489 = vst.msk [vmem:[%s2196_s11 + $0x60] sm:$0xff] %vm288_vm0, %v1473_v14 }
 0x4f4   : > { %v1437_v15 = vpop.f32.mrf.mxu3 }
 0x4f5   : > { %v1438_v16 = vadd.f32 %v1437_v15, %v2188_v27 }
 0x4f7   : > { %v1458_v1 = vmul.f32 0.2, %v1438_v16 }
 0x4f9   : > { %v1474_v19 = vmax.f32 %v1438_v16, %v1458_v1 }
 0x4fb   : > { %1490 = vst.msk [vmem:[%s2196_s11 + $0x68] sm:$0xff] %vm288_vm0, %v1474_v19 }
 0x4fc   : > { %v1440_v20 = vpop.f32.mrf.mxu3 }
 0x4fd   : > { %v1441_v21 = vadd.f32 %v1440_v20, %v2188_v27 }
 0x4ff   : > { %v1459_v22 = vmul.f32 0.2, %v1441_v21 }
 0x501   : > { %v1475_v23 = vmax.f32 %v1441_v21, %v1459_v22 }
 0x503   : > { %1491 = vst.msk [vmem:[%s2196_s11 + $0x70] sm:$0xff] %vm288_vm0, %v1475_v23 }
 0x504   : > { %v1442_v24 = vpop.f32.mrf.mxu3 }
 0x505   : > { %v1443_v25 = vadd.f32 %v1442_v24, %v2188_v27 }
 0x507   : > { %v1460_v26 = vmul.f32 0.2, %v1443_v25 }
 0x509   : > { %v1476_v29 = vmax.f32 %v1443_v25, %v1460_v26 }
 0x50b   : > { %1492 = vst.msk [vmem:[%s2196_s11 + $0x78] sm:$0xff] %vm288_vm0, %v1476_v29 }
 0x50c PF: > { %s16_s18 = sadd.s32 1, %s1934_s18  }
 0x50d   : > { %p13_p7 = scmp.ge.s32.totalorder %s16_s18, 4  }
 0x50f   :  { %15 = sbr.rel (!%p13_p7) target bundleno = 1 (0x1), region = 80 }
 0x514   :  { %1515 = vsyncpa [#allocation3], 1 }
 0x515   :  { %1517 = vsyncpa [#allocation3 + $0x1], 1 }

</bundles_post_ra>
